<compile_context>
chip_gen: v7x
topology: tpu7x:2x2x1
jax: 0.10.0
libtpu: 0.0.40
codegen_flags: <defaults>
</compile_context>

<pallas_src>
import math
from functools import partial

import jax
import jax.numpy as jnp
from jax.experimental import pallas as pl
from jax.experimental.pallas import tpu as pltpu

EPS = 1e-5  # nn.LayerNorm default


# ---------------------------------------------------------------------------
# In-kernel math helpers (f32 elementwise)
# ---------------------------------------------------------------------------

def _layernorm(x, gamma, beta):
    # x: (T, D) f32; gamma/beta: (1, D) f32
    mu = jnp.mean(x, axis=-1, keepdims=True)
    var = jnp.mean(jnp.square(x - mu), axis=-1, keepdims=True)
    return (x - mu) * jax.lax.rsqrt(var + EPS) * gamma + beta


def _gelu_tanh(x):
    # tanh-form GELU: tanh lowers to the EUP slot; |err| vs exact GELU ~3e-4.
    c = 0.7978845608028654  # sqrt(2/pi)
    return 0.5 * x * (1.0 + jnp.tanh(c * (x + 0.044715 * x * x * x)))


# ---------------------------------------------------------------------------
# Fused transformer kernel: one grid step == (one batch block, one layer)
# ---------------------------------------------------------------------------

def transformer_kernel(x_ref, wqkv_ref, wo_ref, w1_ref, w2_ref,
                       vec_ref, b1_ref, norm_ref,
                       o_ref, attn_ref,
                       *, bblk, tokens, heads, dim_head, scale):
    layer = pl.program_id(1)
    n_layers = pl.num_programs(1)
    dim = o_ref.shape[2]
    inner = heads * dim_head
    T = bblk * tokens

    # Initialize the resident activation (the output block itself) at layer 0.
    @pl.when(layer == 0)
    def _():
        o_ref[...] = x_ref[...]

    x0 = o_ref[...].reshape(T, dim)                              # (T, D) f32

    # Packed per-layer vectors: [ln1_g, ln1_b, b_o, ln2_g, ln2_b, b2]
    vec = vec_ref[0]                                             # (6, D) f32
    ln1_g, ln1_b = vec[0:1], vec[1:2]
    b_o = vec[2:3]
    ln2_g, ln2_b = vec[3:4], vec[4:5]
    b2 = vec[5:6]
    b1 = b1_ref[0]                                               # (1, mlp) f32

    # ------------------------- attention block ----------------------------
    xn = _layernorm(x0, ln1_g, ln1_b)
    # Fused QKV projection: one lane-dense bf16 matmul, f32 accumulation.
    qkv = jnp.dot(xn.astype(jnp.bfloat16), wqkv_ref[0],
                  preferred_element_type=jnp.float32)            # (T, 3*inner)

    # Per-head score/softmax/AV core.  3-D dot_generals with a single leading
    # batch dim (the batch block) are the documented-safe Mosaic pattern; the
    # head loop is static and small, and head outputs go straight into a VMEM
    # scratch at lane offsets (no lane-axis concatenate, single projection).
    # TODO(synk): collapse to one 4-D dot_general batched over (batch, heads)
    # once multi-batch-dim dot_general lowering is guaranteed on Mosaic.
    for h in range(heads):
        sl_q = slice(0 * inner + h * dim_head, 0 * inner + (h + 1) * dim_head)
        sl_k = slice(1 * inner + h * dim_head, 1 * inner + (h + 1) * dim_head)
        sl_v = slice(2 * inner + h * dim_head, 2 * inner + (h + 1) * dim_head)
        qh = (qkv[:, sl_q] * scale).reshape(bblk, tokens, dim_head).astype(jnp.bfloat16)
        kh = qkv[:, sl_k].reshape(bblk, tokens, dim_head).astype(jnp.bfloat16)
        vh = qkv[:, sl_v].reshape(bblk, tokens, dim_head).astype(jnp.bfloat16)

        dots = jax.lax.dot_general(
            qh, kh, (((2,), (2,)), ((0,), (0,))),
            preferred_element_type=jnp.float32)                  # (bblk, N, N)
        m = jnp.max(dots, axis=-1, keepdims=True)
        p = jnp.exp(dots - m)                                    # unnormalized probs
        denom = jnp.sum(p, axis=-1, keepdims=True)               # (bblk, N, 1)
        av = jax.lax.dot_general(
            p.astype(jnp.bfloat16), vh, (((2,), (1,)), ((0,), (0,))),
            preferred_element_type=jnp.float32)                  # (bblk, N, dh)
        # Fold softmax normalization into the small AV output (EUP reciprocal).
        av = av * pl.reciprocal(denom, approx=True)
        attn_ref[:, h * dim_head:(h + 1) * dim_head] = av.reshape(T, dim_head)

    proj = jnp.dot(attn_ref[...].astype(jnp.bfloat16), wo_ref[0],
                   preferred_element_type=jnp.float32) + b_o
    x1 = x0 + proj                                               # residual

    # ------------------------- feed-forward block --------------------------
    xn2 = _layernorm(x1, ln2_g, ln2_b)
    hdn = jnp.dot(xn2.astype(jnp.bfloat16), w1_ref[0],
                  preferred_element_type=jnp.float32) + b1
    hdn = _gelu_tanh(hdn)
    y = jnp.dot(hdn.astype(jnp.bfloat16), w2_ref[0],
                preferred_element_type=jnp.float32) + b2
    x2 = x1 + y                                                  # residual

    # Store the activation back into the resident output block.
    o_ref[...] = x2.reshape(bblk, tokens, dim)

    # Final LayerNorm on the last layer only.
    @pl.when(layer == n_layers - 1)
    def _():
        nv = norm_ref[...]                                       # (2, D)
        out = _layernorm(x2, nv[0:1], nv[1:2])
        o_ref[...] = out.reshape(bblk, tokens, dim)


# ---------------------------------------------------------------------------
# pallas_call wrapper
# ---------------------------------------------------------------------------

def transformer_forward(x, params, *, heads, dim_head, batch_blocks=None):
    B, N, D = x.shape
    depth = params["w_qkv"].shape[0]
    inner = heads * dim_head
    mlp = params["w1"].shape[-1]

    if batch_blocks is None:
        batch_blocks = 2 if (B % 2 == 0) else 1   # feed both TCs on v7x
    assert B % batch_blocks == 0
    bblk = B // batch_blocks

    kernel = partial(transformer_kernel, bblk=bblk, tokens=N,
                     heads=heads, dim_head=dim_head, scale=dim_head ** -0.5)

    def per_layer(p):   # stacked (depth, a, b) param -> one layer slice per step
        return pl.BlockSpec((1,) + p.shape[1:], lambda b, l: (l, 0, 0))

    in_specs = [
        pl.BlockSpec((bblk, N, D), lambda b, l: (b, 0, 0)),      # x (read at l==0)
        per_layer(params["w_qkv"]),
        per_layer(params["w_o"]),
        per_layer(params["w1"]),
        per_layer(params["w2"]),
        per_layer(params["vec_d"]),                              # packed D-vectors
        per_layer(params["b1"]),
        pl.BlockSpec(params["norm"].shape, lambda b, l: (0, 0)),  # final norm
    ]
    out_specs = pl.BlockSpec((bblk, N, D), lambda b, l: (b, 0, 0))

    # Explicit VMEM budget: double-buffered blocks + scratch, with headroom.
    def nbytes(shape, dtype):
        return math.prod(shape) * jnp.dtype(dtype).itemsize

    block_bytes = (
        2 * 2 * nbytes((bblk, N, D), jnp.float32)                # x + out, dbl-buffered
        + 2 * (nbytes((D, 3 * inner), jnp.bfloat16)
               + nbytes((inner, D), jnp.bfloat16)
               + nbytes((D, mlp), jnp.bfloat16)
               + nbytes((mlp, D), jnp.bfloat16)
               + nbytes((8, D), jnp.float32)                     # vec pack (padded)
               + nbytes((8, mlp), jnp.float32)                   # b1 (padded)
               + nbytes((8, D), jnp.float32))                    # final norm (padded)
        + nbytes((bblk * N, inner), jnp.float32))                # attention scratch
    vmem_limit = int(min(max(2 * block_bytes + (4 << 20), 32 << 20), 100 << 20))

    out = pl.pallas_call(
        kernel,
        out_shape=jax.ShapeDtypeStruct((B, N, D), jnp.float32),
        grid=(batch_blocks, depth),
        in_specs=in_specs,
        out_specs=out_specs,
        scratch_shapes=[pltpu.VMEM((bblk * N, inner), jnp.float32)],
        compiler_params=pltpu.CompilerParams(
            dimension_semantics=("parallel", "arbitrary"),
            vmem_limit_bytes=vmem_limit),
    )(x, params["w_qkv"], params["w_o"], params["w1"], params["w2"],
      params["vec_d"], params["b1"], params["norm"])
    return out


# ---------------------------------------------------------------------------
# Deterministic synthetic parameters (stacked along depth; matmul weights bf16)
# ---------------------------------------------------------------------------

def init_params(key, dim, depth, heads, dim_head, mlp_dim):
    f32, bf16 = jnp.float32, jnp.bfloat16
    inner = heads * dim_head
    ks = jax.random.split(key, 12)

    def w(k, shape, std=0.05):
        return (jax.random.normal(k, shape, f32) * std).astype(bf16)

    ln1_g = 1.0 + 0.05 * jax.random.normal(ks[4], (depth, dim))
    ln1_b = 0.05 * jax.random.normal(ks[5], (depth, dim))
    b_o = 0.02 * jax.random.normal(ks[6], (depth, dim))
    ln2_g = 1.0 + 0.05 * jax.random.normal(ks[7], (depth, dim))
    ln2_b = 0.05 * jax.random.normal(ks[8], (depth, dim))
    b2 = 0.02 * jax.random.normal(ks[9], (depth, dim))
    norm_g = 1.0 + 0.05 * jax.random.normal(ks[11], (dim,))
    norm_b = jnp.zeros((dim,))

    return dict(
        w_qkv=w(ks[0], (depth, dim, 3 * inner)),                 # (depth, D, 3*inner)
        w_o=w(ks[1], (depth, inner, dim)),                       # (depth, inner, D)
        w1=w(ks[2], (depth, dim, mlp_dim)),                      # (depth, D, mlp)
        w2=w(ks[3], (depth, mlp_dim, dim)),                      # (depth, mlp, D)
        # packed per-layer D-sized vectors: [ln1_g, ln1_b, b_o, ln2_g, ln2_b, b2]
        vec_d=jnp.stack([ln1_g, ln1_b, b_o, ln2_g, ln2_b, b2], axis=1).astype(f32),
        b1=(0.02 * jax.random.normal(ks[10], (depth, 1, mlp_dim))).astype(f32),
        norm=jnp.stack([norm_g, norm_b], axis=0).astype(f32),    # (2, D)
    )


# ---------------------------------------------------------------------------
# Pure-JAX reference (PyTorch-faithful ordering: scale on scores, exact
# softmax, exact GELU; same bf16 matmul-operand casts as the kernel so the
# remaining differences are only the tanh-GELU, the approximate reciprocal,
# and the normalization/rounding order inside attention).
# ---------------------------------------------------------------------------

def _ref_ln(x, g, b):
    mu = jnp.mean(x, axis=-1, keepdims=True)
    var = jnp.mean(jnp.square(x - mu), axis=-1, keepdims=True)
    return (x - mu) * jax.lax.rsqrt(var + EPS) * g + b


def reference_forward(x, params, *, heads, dim_head):
    B, N, D = x.shape
    inner = heads * dim_head
    depth = params["w_qkv"].shape[0]
    scale = dim_head ** (-0.5)
    bf16, f32 = jnp.bfloat16, jnp.float32
    xb = x.astype(f32)
    for l in range(depth):
        vec = params["vec_d"][l]
        ln1_g, ln1_b, b_o, ln2_g, ln2_b, b2 = (vec[0], vec[1], vec[2],
                                               vec[3], vec[4], vec[5])
        b1 = params["b1"][l, 0]

        xn = _ref_ln(xb, ln1_g, ln1_b)
        qkv = jnp.dot(xn.astype(bf16), params["w_qkv"][l],
                      preferred_element_type=f32)                # (B, N, 3*inner)
        q = qkv[..., 0 * inner:1 * inner].reshape(B, N, heads, dim_head).transpose(0, 2, 1, 3)
        k = qkv[..., 1 * inner:2 * inner].reshape(B, N, heads, dim_head).transpose(0, 2, 1, 3)
        v = qkv[..., 2 * inner:3 * inner].reshape(B, N, heads, dim_head).transpose(0, 2, 1, 3)
        dots = jnp.einsum("bhqe,bhke->bhqk", q.astype(bf16), k.astype(bf16),
                          preferred_element_type=f32) * scale
        attn = jax.nn.softmax(dots, axis=-1)
        out = jnp.einsum("bhqk,bhke->bhqe", attn.astype(bf16), v.astype(bf16),
                         preferred_element_type=f32)
        out = out.transpose(0, 2, 1, 3).reshape(B, N, inner)
        proj = jnp.dot(out.astype(bf16), params["w_o"][l],
                       preferred_element_type=f32) + b_o
        xb = xb + proj

        xn2 = _ref_ln(xb, ln2_g, ln2_b)
        h = jnp.dot(xn2.astype(bf16), params["w1"][l],
                    preferred_element_type=f32) + b1
        h = jax.nn.gelu(h, approximate=False)                    # nn.GELU() exact
        y = jnp.dot(h.astype(bf16), params["w2"][l],
                    preferred_element_type=f32) + b2
        xb = xb + y
    nrm = params["norm"]
    return _ref_ln(xb, nrm[0], nrm[1])


if __name__ == "__main__":
    # Small but lane-dense config: D and mlp multiples of 128, N multiple of 8.
    B, N, DIM = 2, 16, 128
    DEPTH, HEADS, DIM_HEAD, MLP_DIM = 2, 4, 32, 256

    key = jax.random.PRNGKey(0)
    kx, kp = jax.random.split(key)
    x = jax.random.normal(kx, (B, N, DIM), dtype=jnp.float32)
    params = init_params(kp, DIM, DEPTH, HEADS, DIM_HEAD, MLP_DIM)

    out = transformer_forward(x, params, heads=HEADS, dim_head=DIM_HEAD)
    out = jax.block_until_ready(out)

    ref = reference_forward(x, params, heads=HEADS, dim_head=DIM_HEAD)
    assert out.shape == (B, N, DIM)
    max_err = float(jnp.max(jnp.abs(out - ref)))
    # Tolerance covers tanh-GELU vs exact GELU, approx reciprocal, and the
    # bf16 rounding-order difference from folding softmax normalization.
    assert jnp.allclose(out, ref, rtol=5e-3, atol=5e-3), f"mismatch: {max_err}"

    print("KERNEL_OK")
</pallas_src>

<mosaic_0001>
module attributes {stable_mosaic.version = 11 : i64} {
  func.func @transformer_kernel(%arg0: i32, %arg1: i32, %arg2: memref<1x16x128xf32, #tpu.memory_space<vmem>>, %arg3: memref<1x128x384xbf16, #tpu.memory_space<vmem>>, %arg4: memref<1x128x128xbf16, #tpu.memory_space<vmem>>, %arg5: memref<1x128x256xbf16, #tpu.memory_space<vmem>>, %arg6: memref<1x256x128xbf16, #tpu.memory_space<vmem>>, %arg7: memref<1x6x128xf32, #tpu.memory_space<vmem>>, %arg8: memref<1x1x256xf32, #tpu.memory_space<vmem>>, %arg9: memref<2x128xf32, #tpu.memory_space<vmem>>, %arg10: memref<1x16x128xf32, #tpu.memory_space<vmem>>, %arg11: memref<16x128xf32, #tpu.memory_space<vmem>>) attributes {dimension_semantics = [#tpu.dimension_semantics<parallel>, #tpu.dimension_semantics<arbitrary>], iteration_bounds = array<i64: 2, 2>, scalar_prefetch = 0 : i64, scratch_operands = 1 : i64, tpu.core_type = #tpu.core_type<tc>, window_params = [{transform_indices = @transform_0, window_bounds = array<i64: 1, 16, 128>}, {transform_indices = @transform_1, window_bounds = array<i64: 1, 128, 384>}, {transform_indices = @transform_2, window_bounds = array<i64: 1, 128, 128>}, {transform_indices = @transform_3, window_bounds = array<i64: 1, 128, 256>}, {transform_indices = @transform_4, window_bounds = array<i64: 1, 256, 128>}, {transform_indices = @transform_5, window_bounds = array<i64: 1, 6, 128>}, {transform_indices = @transform_6, window_bounds = array<i64: 1, 1, 256>}, {pipeline_mode = #tpu.pipeline_mode<synchronous>, transform_indices = @transform_7, window_bounds = array<i64: 2, 128>}, {transform_indices = @transform_8, window_bounds = array<i64: 1, 16, 128>}]} {
    %c0_i32 = arith.constant 0 : i32
    %0 = arith.cmpi eq, %arg1, %c0_i32 : i32
    %1 = arith.extui %0 : i1 to i32
    %c0_i32_0 = arith.constant 0 : i32
    %2 = arith.cmpi ne, %1, %c0_i32_0 : i32
    scf.if %2 {
      %c0_69 = arith.constant 0 : index
      %c0_70 = arith.constant 0 : index
      %c0_71 = arith.constant 0 : index
      %206 = vector.load %arg2[%c0_69, %c0_70, %c0_71] : memref<1x16x128xf32, #tpu.memory_space<vmem>>, vector<1x16x128xf32>
      %c0_72 = arith.constant 0 : index
      %c0_73 = arith.constant 0 : index
      %c0_74 = arith.constant 0 : index
      %207 = vector.load %arg10[%c0_72, %c0_73, %c0_74] : memref<1x16x128xf32, #tpu.memory_space<vmem>>, vector<1x16x128xf32>
      tpu.vector_store %arg10[%c0_72, %c0_73, %c0_74], %206 {strides = array<i32>} : memref<1x16x128xf32, #tpu.memory_space<vmem>>, vector<1x16x128xf32>,
    } else {
    }
    %c0 = arith.constant 0 : index
    %c0_1 = arith.constant 0 : index
    %c0_2 = arith.constant 0 : index
    %3 = vector.load %arg10[%c0, %c0_1, %c0_2] : memref<1x16x128xf32, #tpu.memory_space<vmem>>, vector<1x16x128xf32>
    %4 = vector.shape_cast %3 : vector<1x16x128xf32> to vector<16x128xf32>
    %c0_3 = arith.constant 0 : index
    %c0_4 = arith.constant 0 : index
    %c0_5 = arith.constant 0 : index
    %5 = vector.load %arg7[%c0_3, %c0_4, %c0_5] : memref<1x6x128xf32, #tpu.memory_space<vmem>>, vector<1x6x128xf32>
    %6 = vector.shape_cast %5 : vector<1x6x128xf32> to vector<6x128xf32>
    %7 = vector.extract_strided_slice %6 {offsets = [0, 0], sizes = [1, 128], strides = [1, 1]} : vector<6x128xf32> to vector<1x128xf32>
    %8 = vector.extract_strided_slice %6 {offsets = [1, 0], sizes = [1, 128], strides = [1, 1]} : vector<6x128xf32> to vector<1x128xf32>
    %9 = vector.extract_strided_slice %6 {offsets = [2, 0], sizes = [1, 128], strides = [1, 1]} : vector<6x128xf32> to vector<1x128xf32>
    %10 = vector.extract_strided_slice %6 {offsets = [3, 0], sizes = [1, 128], strides = [1, 1]} : vector<6x128xf32> to vector<1x128xf32>
    %11 = vector.extract_strided_slice %6 {offsets = [4, 0], sizes = [1, 128], strides = [1, 1]} : vector<6x128xf32> to vector<1x128xf32>
    %12 = vector.extract_strided_slice %6 {offsets = [5, 0], sizes = [1, 128], strides = [1, 1]} : vector<6x128xf32> to vector<1x128xf32>
    %c0_6 = arith.constant 0 : index
    %c0_7 = arith.constant 0 : index
    %c0_8 = arith.constant 0 : index
    %13 = vector.load %arg8[%c0_6, %c0_7, %c0_8] : memref<1x1x256xf32, #tpu.memory_space<vmem>>, vector<1x1x256xf32>
    %14 = vector.shape_cast %13 : vector<1x1x256xf32> to vector<1x256xf32>
    %cst = arith.constant dense<0.000000e+00> : vector<16xf32>
    %15 = vector.multi_reduction <add>, %4, %cst [1] : vector<16x128xf32> to vector<16xf32>
    %16 = vector.shape_cast %15 : vector<16xf32> to vector<16x1xf32>
    %cst_9 = arith.constant 1.280000e+02 : f32
    %17 = vector.broadcast %cst_9 : f32 to vector<16x1xf32>
    %18 = arith.divf %16, %17 : vector<16x1xf32>
    %19 = vector.broadcast %18 : vector<16x1xf32> to vector<16x128xf32>
    %20 = arith.subf %4, %19 : vector<16x128xf32>
    %21 = arith.mulf %20, %20 : vector<16x128xf32>
    %cst_10 = arith.constant dense<0.000000e+00> : vector<16xf32>
    %22 = vector.multi_reduction <add>, %21, %cst_10 [1] : vector<16x128xf32> to vector<16xf32>
    %23 = vector.shape_cast %22 : vector<16xf32> to vector<16x1xf32>
    %cst_11 = arith.constant 1.280000e+02 : f32
    %24 = vector.broadcast %cst_11 : f32 to vector<16x1xf32>
    %25 = arith.divf %23, %24 : vector<16x1xf32>
    %26 = vector.broadcast %18 : vector<16x1xf32> to vector<16x128xf32>
    %27 = arith.subf %4, %26 : vector<16x128xf32>
    %cst_12 = arith.constant 9.99999974E-6 : f32
    %28 = vector.broadcast %cst_12 : f32 to vector<16x1xf32>
    %29 = arith.addf %25, %28 : vector<16x1xf32>
    %30 = math.rsqrt %29 : vector<16x1xf32>
    %31 = vector.broadcast %30 : vector<16x1xf32> to vector<16x128xf32>
    %32 = arith.mulf %27, %31 : vector<16x128xf32>
    %33 = vector.broadcast %7 : vector<1x128xf32> to vector<16x128xf32>
    %34 = arith.mulf %32, %33 : vector<16x128xf32>
    %35 = vector.broadcast %8 : vector<1x128xf32> to vector<16x128xf32>
    %36 = arith.addf %34, %35 : vector<16x128xf32>
    %37 = arith.truncf %36 : vector<16x128xf32> to vector<16x128xbf16>
    %c0_13 = arith.constant 0 : index
    %c0_14 = arith.constant 0 : index
    %c0_15 = arith.constant 0 : index
    %38 = vector.load %arg3[%c0_13, %c0_14, %c0_15] : memref<1x128x384xbf16, #tpu.memory_space<vmem>>, vector<1x128x384xbf16>
    %39 = vector.shape_cast %38 : vector<1x128x384xbf16> to vector<128x384xbf16>
    %cst_16 = arith.constant dense<0.000000e+00> : vector<16x384xf32>
    %40 = tpu.matmul %37, %39, %cst_16 {dimension_numbers = #tpu.dot_dimension_numbers<[1], [0], [0], [1], [0, 0, 1, 1], [], []>} : vector<16x128xbf16>, vector<128x384xbf16>, vector<16x384xf32> -> vector<16x384xf32>
    %41 = vector.extract_strided_slice %40 {offsets = [0, 0], sizes = [16, 32], strides = [1, 1]} : vector<16x384xf32> to vector<16x32xf32>
    %cst_17 = arith.constant 0.176776692 : f32
    %42 = vector.broadcast %cst_17 : f32 to vector<16x32xf32>
    %43 = arith.mulf %41, %42 : vector<16x32xf32>
    %44 = vector.shape_cast %43 : vector<16x32xf32> to vector<1x16x32xf32>
    %45 = arith.truncf %44 : vector<1x16x32xf32> to vector<1x16x32xbf16>
    %46 = vector.extract_strided_slice %40 {offsets = [0, 128], sizes = [16, 32], strides = [1, 1]} : vector<16x384xf32> to vector<16x32xf32>
    %47 = vector.shape_cast %46 : vector<16x32xf32> to vector<1x16x32xf32>
    %48 = arith.truncf %47 : vector<1x16x32xf32> to vector<1x16x32xbf16>
    %49 = vector.extract_strided_slice %40 {offsets = [0, 256], sizes = [16, 32], strides = [1, 1]} : vector<16x384xf32> to vector<16x32xf32>
    %50 = vector.shape_cast %49 : vector<16x32xf32> to vector<1x16x32xf32>
    %51 = arith.truncf %50 : vector<1x16x32xf32> to vector<1x16x32xbf16>
    %cst_18 = arith.constant dense<0.000000e+00> : vector<1x16x16xf32>
    %52 = tpu.matmul %45, %48, %cst_18 {dimension_numbers = #tpu.dot_dimension_numbers<[2], [2], [1], [1], [0, 0, 0, 1, 1, 1], [0], [0]>} : vector<1x16x32xbf16>, vector<1x16x32xbf16>, vector<1x16x16xf32> -> vector<1x16x16xf32>
    %cst_19 = arith.constant dense<0xFF800000> : vector<1x16xf32>
    %53 = vector.multi_reduction <maximumf>, %52, %cst_19 [2] : vector<1x16x16xf32> to vector<1x16xf32>
    %54 = vector.shape_cast %53 : vector<1x16xf32> to vector<1x16x1xf32>
    %55 = vector.broadcast %54 : vector<1x16x1xf32> to vector<1x16x16xf32>
    %56 = arith.subf %52, %55 : vector<1x16x16xf32>
    %57 = math.exp %56 : vector<1x16x16xf32>
    %cst_20 = arith.constant dense<0.000000e+00> : vector<1x16xf32>
    %58 = vector.multi_reduction <add>, %57, %cst_20 [2] : vector<1x16x16xf32> to vector<1x16xf32>
    %59 = vector.shape_cast %58 : vector<1x16xf32> to vector<1x16x1xf32>
    %60 = arith.truncf %57 : vector<1x16x16xf32> to vector<1x16x16xbf16>
    %cst_21 = arith.constant dense<0.000000e+00> : vector<1x16x32xf32>
    %61 = tpu.matmul %60, %51, %cst_21 {dimension_numbers = #tpu.dot_dimension_numbers<[2], [1], [1], [2], [0, 0, 0, 1, 1, 2], [0], [0]>} : vector<1x16x16xbf16>, vector<1x16x32xbf16>, vector<1x16x32xf32> -> vector<1x16x32xf32>
    %62 = tpu.reciprocal %59 {approx = true} : vector<1x16x1xf32> -> vector<1x16x1xf32>
    %63 = vector.broadcast %62 : vector<1x16x1xf32> to vector<1x16x32xf32>
    %64 = arith.mulf %61, %63 : vector<1x16x32xf32>
    %65 = vector.shape_cast %64 : vector<1x16x32xf32> to vector<16x32xf32>
    %c0_22 = arith.constant 0 : index
    %c0_23 = arith.constant 0 : index
    %66 = vector.load %arg11[%c0_22, %c0_23] : memref<16x128xf32, #tpu.memory_space<vmem>>, vector<16x32xf32>
    tpu.vector_store %arg11[%c0_22, %c0_23], %65 {strides = array<i32>} : memref<16x128xf32, #tpu.memory_space<vmem>>, vector<16x32xf32>,
    %67 = vector.extract_strided_slice %40 {offsets = [0, 32], sizes = [16, 32], strides = [1, 1]} : vector<16x384xf32> to vector<16x32xf32>
    %cst_24 = arith.constant 0.176776692 : f32
    %68 = vector.broadcast %cst_24 : f32 to vector<16x32xf32>
    %69 = arith.mulf %67, %68 : vector<16x32xf32>
    %70 = vector.shape_cast %69 : vector<16x32xf32> to vector<1x16x32xf32>
    %71 = arith.truncf %70 : vector<1x16x32xf32> to vector<1x16x32xbf16>
    %72 = vector.extract_strided_slice %40 {offsets = [0, 160], sizes = [16, 32], strides = [1, 1]} : vector<16x384xf32> to vector<16x32xf32>
    %73 = vector.shape_cast %72 : vector<16x32xf32> to vector<1x16x32xf32>
    %74 = arith.truncf %73 : vector<1x16x32xf32> to vector<1x16x32xbf16>
    %75 = vector.extract_strided_slice %40 {offsets = [0, 288], sizes = [16, 32], strides = [1, 1]} : vector<16x384xf32> to vector<16x32xf32>
    %76 = vector.shape_cast %75 : vector<16x32xf32> to vector<1x16x32xf32>
    %77 = arith.truncf %76 : vector<1x16x32xf32> to vector<1x16x32xbf16>
    %cst_25 = arith.constant dense<0.000000e+00> : vector<1x16x16xf32>
    %78 = tpu.matmul %71, %74, %cst_25 {dimension_numbers = #tpu.dot_dimension_numbers<[2], [2], [1], [1], [0, 0, 0, 1, 1, 1], [0], [0]>} : vector<1x16x32xbf16>, vector<1x16x32xbf16>, vector<1x16x16xf32> -> vector<1x16x16xf32>
    %cst_26 = arith.constant dense<0xFF800000> : vector<1x16xf32>
    %79 = vector.multi_reduction <maximumf>, %78, %cst_26 [2] : vector<1x16x16xf32> to vector<1x16xf32>
    %80 = vector.shape_cast %79 : vector<1x16xf32> to vector<1x16x1xf32>
    %81 = vector.broadcast %80 : vector<1x16x1xf32> to vector<1x16x16xf32>
    %82 = arith.subf %78, %81 : vector<1x16x16xf32>
    %83 = math.exp %82 : vector<1x16x16xf32>
    %cst_27 = arith.constant dense<0.000000e+00> : vector<1x16xf32>
    %84 = vector.multi_reduction <add>, %83, %cst_27 [2] : vector<1x16x16xf32> to vector<1x16xf32>
    %85 = vector.shape_cast %84 : vector<1x16xf32> to vector<1x16x1xf32>
    %86 = arith.truncf %83 : vector<1x16x16xf32> to vector<1x16x16xbf16>
    %cst_28 = arith.constant dense<0.000000e+00> : vector<1x16x32xf32>
    %87 = tpu.matmul %86, %77, %cst_28 {dimension_numbers = #tpu.dot_dimension_numbers<[2], [1], [1], [2], [0, 0, 0, 1, 1, 2], [0], [0]>} : vector<1x16x16xbf16>, vector<1x16x32xbf16>, vector<1x16x32xf32> -> vector<1x16x32xf32>
    %88 = tpu.reciprocal %85 {approx = true} : vector<1x16x1xf32> -> vector<1x16x1xf32>
    %89 = vector.broadcast %88 : vector<1x16x1xf32> to vector<1x16x32xf32>
    %90 = arith.mulf %87, %89 : vector<1x16x32xf32>
    %91 = vector.shape_cast %90 : vector<1x16x32xf32> to vector<16x32xf32>
    %c0_29 = arith.constant 0 : index
    %c32 = arith.constant 32 : index
    %92 = vector.load %arg11[%c0_29, %c32] : memref<16x128xf32, #tpu.memory_space<vmem>>, vector<16x32xf32>
    tpu.vector_store %arg11[%c0_29, %c32], %91 {strides = array<i32>} : memref<16x128xf32, #tpu.memory_space<vmem>>, vector<16x32xf32>,
    %93 = vector.extract_strided_slice %40 {offsets = [0, 64], sizes = [16, 32], strides = [1, 1]} : vector<16x384xf32> to vector<16x32xf32>
    %cst_30 = arith.constant 0.176776692 : f32
    %94 = vector.broadcast %cst_30 : f32 to vector<16x32xf32>
    %95 = arith.mulf %93, %94 : vector<16x32xf32>
    %96 = vector.shape_cast %95 : vector<16x32xf32> to vector<1x16x32xf32>
    %97 = arith.truncf %96 : vector<1x16x32xf32> to vector<1x16x32xbf16>
    %98 = vector.extract_strided_slice %40 {offsets = [0, 192], sizes = [16, 32], strides = [1, 1]} : vector<16x384xf32> to vector<16x32xf32>
    %99 = vector.shape_cast %98 : vector<16x32xf32> to vector<1x16x32xf32>
    %100 = arith.truncf %99 : vector<1x16x32xf32> to vector<1x16x32xbf16>
    %101 = vector.extract_strided_slice %40 {offsets = [0, 320], sizes = [16, 32], strides = [1, 1]} : vector<16x384xf32> to vector<16x32xf32>
    %102 = vector.shape_cast %101 : vector<16x32xf32> to vector<1x16x32xf32>
    %103 = arith.truncf %102 : vector<1x16x32xf32> to vector<1x16x32xbf16>
    %cst_31 = arith.constant dense<0.000000e+00> : vector<1x16x16xf32>
    %104 = tpu.matmul %97, %100, %cst_31 {dimension_numbers = #tpu.dot_dimension_numbers<[2], [2], [1], [1], [0, 0, 0, 1, 1, 1], [0], [0]>} : vector<1x16x32xbf16>, vector<1x16x32xbf16>, vector<1x16x16xf32> -> vector<1x16x16xf32>
    %cst_32 = arith.constant dense<0xFF800000> : vector<1x16xf32>
    %105 = vector.multi_reduction <maximumf>, %104, %cst_32 [2] : vector<1x16x16xf32> to vector<1x16xf32>
    %106 = vector.shape_cast %105 : vector<1x16xf32> to vector<1x16x1xf32>
    %107 = vector.broadcast %106 : vector<1x16x1xf32> to vector<1x16x16xf32>
    %108 = arith.subf %104, %107 : vector<1x16x16xf32>
    %109 = math.exp %108 : vector<1x16x16xf32>
    %cst_33 = arith.constant dense<0.000000e+00> : vector<1x16xf32>
    %110 = vector.multi_reduction <add>, %109, %cst_33 [2] : vector<1x16x16xf32> to vector<1x16xf32>
    %111 = vector.shape_cast %110 : vector<1x16xf32> to vector<1x16x1xf32>
    %112 = arith.truncf %109 : vector<1x16x16xf32> to vector<1x16x16xbf16>
    %cst_34 = arith.constant dense<0.000000e+00> : vector<1x16x32xf32>
    %113 = tpu.matmul %112, %103, %cst_34 {dimension_numbers = #tpu.dot_dimension_numbers<[2], [1], [1], [2], [0, 0, 0, 1, 1, 2], [0], [0]>} : vector<1x16x16xbf16>, vector<1x16x32xbf16>, vector<1x16x32xf32> -> vector<1x16x32xf32>
    %114 = tpu.reciprocal %111 {approx = true} : vector<1x16x1xf32> -> vector<1x16x1xf32>
    %115 = vector.broadcast %114 : vector<1x16x1xf32> to vector<1x16x32xf32>
    %116 = arith.mulf %113, %115 : vector<1x16x32xf32>
    %117 = vector.shape_cast %116 : vector<1x16x32xf32> to vector<16x32xf32>
    %c0_35 = arith.constant 0 : index
    %c64 = arith.constant 64 : index
    %118 = vector.load %arg11[%c0_35, %c64] : memref<16x128xf32, #tpu.memory_space<vmem>>, vector<16x32xf32>
    tpu.vector_store %arg11[%c0_35, %c64], %117 {strides = array<i32>} : memref<16x128xf32, #tpu.memory_space<vmem>>, vector<16x32xf32>,
    %119 = vector.extract_strided_slice %40 {offsets = [0, 96], sizes = [16, 32], strides = [1, 1]} : vector<16x384xf32> to vector<16x32xf32>
    %cst_36 = arith.constant 0.176776692 : f32
    %120 = vector.broadcast %cst_36 : f32 to vector<16x32xf32>
    %121 = arith.mulf %119, %120 : vector<16x32xf32>
    %122 = vector.shape_cast %121 : vector<16x32xf32> to vector<1x16x32xf32>
    %123 = arith.truncf %122 : vector<1x16x32xf32> to vector<1x16x32xbf16>
    %124 = vector.extract_strided_slice %40 {offsets = [0, 224], sizes = [16, 32], strides = [1, 1]} : vector<16x384xf32> to vector<16x32xf32>
    %125 = vector.shape_cast %124 : vector<16x32xf32> to vector<1x16x32xf32>
    %126 = arith.truncf %125 : vector<1x16x32xf32> to vector<1x16x32xbf16>
    %127 = vector.extract_strided_slice %40 {offsets = [0, 352], sizes = [16, 32], strides = [1, 1]} : vector<16x384xf32> to vector<16x32xf32>
    %128 = vector.shape_cast %127 : vector<16x32xf32> to vector<1x16x32xf32>
    %129 = arith.truncf %128 : vector<1x16x32xf32> to vector<1x16x32xbf16>
    %cst_37 = arith.constant dense<0.000000e+00> : vector<1x16x16xf32>
    %130 = tpu.matmul %123, %126, %cst_37 {dimension_numbers = #tpu.dot_dimension_numbers<[2], [2], [1], [1], [0, 0, 0, 1, 1, 1], [0], [0]>} : vector<1x16x32xbf16>, vector<1x16x32xbf16>, vector<1x16x16xf32> -> vector<1x16x16xf32>
    %cst_38 = arith.constant dense<0xFF800000> : vector<1x16xf32>
    %131 = vector.multi_reduction <maximumf>, %130, %cst_38 [2] : vector<1x16x16xf32> to vector<1x16xf32>
    %132 = vector.shape_cast %131 : vector<1x16xf32> to vector<1x16x1xf32>
    %133 = vector.broadcast %132 : vector<1x16x1xf32> to vector<1x16x16xf32>
    %134 = arith.subf %130, %133 : vector<1x16x16xf32>
    %135 = math.exp %134 : vector<1x16x16xf32>
    %cst_39 = arith.constant dense<0.000000e+00> : vector<1x16xf32>
    %136 = vector.multi_reduction <add>, %135, %cst_39 [2] : vector<1x16x16xf32> to vector<1x16xf32>
    %137 = vector.shape_cast %136 : vector<1x16xf32> to vector<1x16x1xf32>
    %138 = arith.truncf %135 : vector<1x16x16xf32> to vector<1x16x16xbf16>
    %cst_40 = arith.constant dense<0.000000e+00> : vector<1x16x32xf32>
    %139 = tpu.matmul %138, %129, %cst_40 {dimension_numbers = #tpu.dot_dimension_numbers<[2], [1], [1], [2], [0, 0, 0, 1, 1, 2], [0], [0]>} : vector<1x16x16xbf16>, vector<1x16x32xbf16>, vector<1x16x32xf32> -> vector<1x16x32xf32>
    %140 = tpu.reciprocal %137 {approx = true} : vector<1x16x1xf32> -> vector<1x16x1xf32>
    %141 = vector.broadcast %140 : vector<1x16x1xf32> to vector<1x16x32xf32>
    %142 = arith.mulf %139, %141 : vector<1x16x32xf32>
    %143 = vector.shape_cast %142 : vector<1x16x32xf32> to vector<16x32xf32>
    %c0_41 = arith.constant 0 : index
    %c96 = arith.constant 96 : index
    %144 = vector.load %arg11[%c0_41, %c96] : memref<16x128xf32, #tpu.memory_space<vmem>>, vector<16x32xf32>
    tpu.vector_store %arg11[%c0_41, %c96], %143 {strides = array<i32>} : memref<16x128xf32, #tpu.memory_space<vmem>>, vector<16x32xf32>,
    %c0_42 = arith.constant 0 : index
    %c0_43 = arith.constant 0 : index
    %145 = vector.load %arg11[%c0_42, %c0_43] : memref<16x128xf32, #tpu.memory_space<vmem>>, vector<16x128xf32>
    %146 = arith.truncf %145 : vector<16x128xf32> to vector<16x128xbf16>
    %c0_44 = arith.constant 0 : index
    %c0_45 = arith.constant 0 : index
    %c0_46 = arith.constant 0 : index
    %147 = vector.load %arg4[%c0_44, %c0_45, %c0_46] : memref<1x128x128xbf16, #tpu.memory_space<vmem>>, vector<1x128x128xbf16>
    %148 = vector.shape_cast %147 : vector<1x128x128xbf16> to vector<128x128xbf16>
    %cst_47 = arith.constant dense<0.000000e+00> : vector<16x128xf32>
    %149 = tpu.matmul %146, %148, %cst_47 {dimension_numbers = #tpu.dot_dimension_numbers<[1], [0], [0], [1], [0, 0, 1, 1], [], []>} : vector<16x128xbf16>, vector<128x128xbf16>, vector<16x128xf32> -> vector<16x128xf32>
    %150 = vector.broadcast %9 : vector<1x128xf32> to vector<16x128xf32>
    %151 = arith.addf %149, %150 : vector<16x128xf32>
    %152 = arith.addf %4, %151 : vector<16x128xf32>
    %cst_48 = arith.constant dense<0.000000e+00> : vector<16xf32>
    %153 = vector.multi_reduction <add>, %152, %cst_48 [1] : vector<16x128xf32> to vector<16xf32>
    %154 = vector.shape_cast %153 : vector<16xf32> to vector<16x1xf32>
    %cst_49 = arith.constant 1.280000e+02 : f32
    %155 = vector.broadcast %cst_49 : f32 to vector<16x1xf32>
    %156 = arith.divf %154, %155 : vector<16x1xf32>
    %157 = vector.broadcast %156 : vector<16x1xf32> to vector<16x128xf32>
    %158 = arith.subf %152, %157 : vector<16x128xf32>
    %159 = arith.mulf %158, %158 : vector<16x128xf32>
    %cst_50 = arith.constant dense<0.000000e+00> : vector<16xf32>
    %160 = vector.multi_reduction <add>, %159, %cst_50 [1] : vector<16x128xf32> to vector<16xf32>
    %161 = vector.shape_cast %160 : vector<16xf32> to vector<16x1xf32>
    %cst_51 = arith.constant 1.280000e+02 : f32
    %162 = vector.broadcast %cst_51 : f32 to vector<16x1xf32>
    %163 = arith.divf %161, %162 : vector<16x1xf32>
    %164 = vector.broadcast %156 : vector<16x1xf32> to vector<16x128xf32>
    %165 = arith.subf %152, %164 : vector<16x128xf32>
    %cst_52 = arith.constant 9.99999974E-6 : f32
    %166 = vector.broadcast %cst_52 : f32 to vector<16x1xf32>
    %167 = arith.addf %163, %166 : vector<16x1xf32>
    %168 = math.rsqrt %167 : vector<16x1xf32>
    %169 = vector.broadcast %168 : vector<16x1xf32> to vector<16x128xf32>
    %170 = arith.mulf %165, %169 : vector<16x128xf32>
    %171 = vector.broadcast %10 : vector<1x128xf32> to vector<16x128xf32>
    %172 = arith.mulf %170, %171 : vector<16x128xf32>
    %173 = vector.broadcast %11 : vector<1x128xf32> to vector<16x128xf32>
    %174 = arith.addf %172, %173 : vector<16x128xf32>
    %175 = arith.truncf %174 : vector<16x128xf32> to vector<16x128xbf16>
    %c0_53 = arith.constant 0 : index
    %c0_54 = arith.constant 0 : index
    %c0_55 = arith.constant 0 : index
    %176 = vector.load %arg5[%c0_53, %c0_54, %c0_55] : memref<1x128x256xbf16, #tpu.memory_space<vmem>>, vector<1x128x256xbf16>
    %177 = vector.shape_cast %176 : vector<1x128x256xbf16> to vector<128x256xbf16>
    %cst_56 = arith.constant dense<0.000000e+00> : vector<16x256xf32>
    %178 = tpu.matmul %175, %177, %cst_56 {dimension_numbers = #tpu.dot_dimension_numbers<[1], [0], [0], [1], [0, 0, 1, 1], [], []>} : vector<16x128xbf16>, vector<128x256xbf16>, vector<16x256xf32> -> vector<16x256xf32>
    %179 = vector.broadcast %14 : vector<1x256xf32> to vector<16x256xf32>
    %180 = arith.addf %178, %179 : vector<16x256xf32>
    %cst_57 = arith.constant 5.000000e-01 : f32
    %181 = vector.broadcast %cst_57 : f32 to vector<16x256xf32>
    %182 = arith.mulf %181, %180 : vector<16x256xf32>
    %cst_58 = arith.constant 4.471500e-02 : f32
    %183 = vector.broadcast %cst_58 : f32 to vector<16x256xf32>
    %184 = arith.mulf %183, %180 : vector<16x256xf32>
    %185 = arith.mulf %184, %180 : vector<16x256xf32>
    %186 = arith.mulf %185, %180 : vector<16x256xf32>
    %187 = arith.addf %180, %186 : vector<16x256xf32>
    %cst_59 = arith.constant 0.797884583 : f32
    %188 = vector.broadcast %cst_59 : f32 to vector<16x256xf32>
    %189 = arith.mulf %188, %187 : vector<16x256xf32>
    %190 = math.tanh %189 : vector<16x256xf32>
    %cst_60 = arith.constant 1.000000e+00 : f32
    %191 = vector.broadcast %cst_60 : f32 to vector<16x256xf32>
    %192 = arith.addf %191, %190 : vector<16x256xf32>
    %193 = arith.mulf %182, %192 : vector<16x256xf32>
    %194 = arith.truncf %193 : vector<16x256xf32> to vector<16x256xbf16>
    %c0_61 = arith.constant 0 : index
    %c0_62 = arith.constant 0 : index
    %c0_63 = arith.constant 0 : index
    %195 = vector.load %arg6[%c0_61, %c0_62, %c0_63] : memref<1x256x128xbf16, #tpu.memory_space<vmem>>, vector<1x256x128xbf16>
    %196 = vector.shape_cast %195 : vector<1x256x128xbf16> to vector<256x128xbf16>
    %cst_64 = arith.constant dense<0.000000e+00> : vector<16x128xf32>
    %197 = tpu.matmul %194, %196, %cst_64 {dimension_numbers = #tpu.dot_dimension_numbers<[1], [0], [0], [1], [0, 0, 1, 1], [], []>} : vector<16x256xbf16>, vector<256x128xbf16>, vector<16x128xf32> -> vector<16x128xf32>
    %198 = vector.broadcast %12 : vector<1x128xf32> to vector<16x128xf32>
    %199 = arith.addf %197, %198 : vector<16x128xf32>
    %200 = arith.addf %152, %199 : vector<16x128xf32>
    %201 = vector.shape_cast %200 : vector<16x128xf32> to vector<1x16x128xf32>
    %c0_65 = arith.constant 0 : index
    %c0_66 = arith.constant 0 : index
    %c0_67 = arith.constant 0 : index
    %202 = vector.load %arg10[%c0_65, %c0_66, %c0_67] : memref<1x16x128xf32, #tpu.memory_space<vmem>>, vector<1x16x128xf32>
    tpu.vector_store %arg10[%c0_65, %c0_66, %c0_67], %201 {strides = array<i32>} : memref<1x16x128xf32, #tpu.memory_space<vmem>>, vector<1x16x128xf32>,
    %c1_i32 = arith.constant 1 : i32
    %203 = arith.cmpi eq, %arg1, %c1_i32 : i32
    %204 = arith.extui %203 : i1 to i32
    %c0_i32_68 = arith.constant 0 : i32
    %205 = arith.cmpi ne, %204, %c0_i32_68 : i32
    scf.if %205 {
      %c0_69 = arith.constant 0 : index
      %c0_70 = arith.constant 0 : index
      %206 = vector.load %arg9[%c0_69, %c0_70] : memref<2x128xf32, #tpu.memory_space<vmem>>, vector<2x128xf32>
      %207 = vector.extract_strided_slice %206 {offsets = [0, 0], sizes = [1, 128], strides = [1, 1]} : vector<2x128xf32> to vector<1x128xf32>
      %208 = vector.extract_strided_slice %206 {offsets = [1, 0], sizes = [1, 128], strides = [1, 1]} : vector<2x128xf32> to vector<1x128xf32>
      %cst_71 = arith.constant dense<0.000000e+00> : vector<16xf32>
      %209 = vector.multi_reduction <add>, %200, %cst_71 [1] : vector<16x128xf32> to vector<16xf32>
      %210 = vector.shape_cast %209 : vector<16xf32> to vector<16x1xf32>
      %cst_72 = arith.constant 1.280000e+02 : f32
      %211 = vector.broadcast %cst_72 : f32 to vector<16x1xf32>
      %212 = arith.divf %210, %211 : vector<16x1xf32>
      %213 = vector.broadcast %212 : vector<16x1xf32> to vector<16x128xf32>
      %214 = arith.subf %200, %213 : vector<16x128xf32>
      %215 = arith.mulf %214, %214 : vector<16x128xf32>
      %cst_73 = arith.constant dense<0.000000e+00> : vector<16xf32>
      %216 = vector.multi_reduction <add>, %215, %cst_73 [1] : vector<16x128xf32> to vector<16xf32>
      %217 = vector.shape_cast %216 : vector<16xf32> to vector<16x1xf32>
      %cst_74 = arith.constant 1.280000e+02 : f32
      %218 = vector.broadcast %cst_74 : f32 to vector<16x1xf32>
      %219 = arith.divf %217, %218 : vector<16x1xf32>
      %220 = vector.broadcast %212 : vector<16x1xf32> to vector<16x128xf32>
      %221 = arith.subf %200, %220 : vector<16x128xf32>
      %cst_75 = arith.constant 9.99999974E-6 : f32
      %222 = vector.broadcast %cst_75 : f32 to vector<16x1xf32>
      %223 = arith.addf %219, %222 : vector<16x1xf32>
      %224 = math.rsqrt %223 : vector<16x1xf32>
      %225 = vector.broadcast %224 : vector<16x1xf32> to vector<16x128xf32>
      %226 = arith.mulf %221, %225 : vector<16x128xf32>
      %227 = vector.broadcast %207 : vector<1x128xf32> to vector<16x128xf32>
      %228 = arith.mulf %226, %227 : vector<16x128xf32>
      %229 = vector.broadcast %208 : vector<1x128xf32> to vector<16x128xf32>
      %230 = arith.addf %228, %229 : vector<16x128xf32>
      %231 = vector.shape_cast %230 : vector<16x128xf32> to vector<1x16x128xf32>
      %c0_76 = arith.constant 0 : index
      %c0_77 = arith.constant 0 : index
      %c0_78 = arith.constant 0 : index
      %232 = vector.load %arg10[%c0_76, %c0_77, %c0_78] : memref<1x16x128xf32, #tpu.memory_space<vmem>>, vector<1x16x128xf32>
      tpu.vector_store %arg10[%c0_76, %c0_77, %c0_78], %231 {strides = array<i32>} : memref<1x16x128xf32, #tpu.memory_space<vmem>>, vector<1x16x128xf32>,
    } else {
    }
    return
  }
  func.func @transform_0(%arg0: i32, %arg1: i32) -> (i32, i32, i32) {
    %c0_i32 = arith.constant 0 : i32
    %c0_i32_0 = arith.constant 0 : i32
    %c0_i32_1 = arith.constant 0 : i32
    return %arg0, %c0_i32, %c0_i32_0 : i32, i32, i32
  }
  func.func @transform_1(%arg0: i32, %arg1: i32) -> (i32, i32, i32) {
    %c0_i32 = arith.constant 0 : i32
    %c0_i32_0 = arith.constant 0 : i32
    %c0_i32_1 = arith.constant 0 : i32
    return %arg1, %c0_i32, %c0_i32_0 : i32, i32, i32
  }
  func.func @transform_2(%arg0: i32, %arg1: i32) -> (i32, i32, i32) {
    %c0_i32 = arith.constant 0 : i32
    %c0_i32_0 = arith.constant 0 : i32
    %c0_i32_1 = arith.constant 0 : i32
    return %arg1, %c0_i32, %c0_i32_0 : i32, i32, i32
  }
  func.func @transform_3(%arg0: i32, %arg1: i32) -> (i32, i32, i32) {
    %c0_i32 = arith.constant 0 : i32
    %c0_i32_0 = arith.constant 0 : i32
    %c0_i32_1 = arith.constant 0 : i32
    return %arg1, %c0_i32, %c0_i32_0 : i32, i32, i32
  }
  func.func @transform_4(%arg0: i32, %arg1: i32) -> (i32, i32, i32) {
    %c0_i32 = arith.constant 0 : i32
    %c0_i32_0 = arith.constant 0 : i32
    %c0_i32_1 = arith.constant 0 : i32
    return %arg1, %c0_i32, %c0_i32_0 : i32, i32, i32
  }
  func.func @transform_5(%arg0: i32, %arg1: i32) -> (i32, i32, i32) {
    %c0_i32 = arith.constant 0 : i32
    %c0_i32_0 = arith.constant 0 : i32
    %c0_i32_1 = arith.constant 0 : i32
    return %arg1, %c0_i32, %c0_i32_0 : i32, i32, i32
  }
  func.func @transform_6(%arg0: i32, %arg1: i32) -> (i32, i32, i32) {
    %c0_i32 = arith.constant 0 : i32
    %c0_i32_0 = arith.constant 0 : i32
    %c0_i32_1 = arith.constant 0 : i32
    return %arg1, %c0_i32, %c0_i32_0 : i32, i32, i32
  }
  func.func @transform_7(%arg0: i32, %arg1: i32) -> (i32, i32) {
    %c0_i32 = arith.constant 0 : i32
    %c0_i32_0 = arith.constant 0 : i32
    %c0_i32_1 = arith.constant 0 : i32
    return %c0_i32, %c0_i32_0 : i32, i32
  }
  func.func @transform_8(%arg0: i32, %arg1: i32) -> (i32, i32, i32) {
    %c0_i32 = arith.constant 0 : i32
    %c0_i32_0 = arith.constant 0 : i32
    %c0_i32_1 = arith.constant 0 : i32
    return %arg0, %c0_i32, %c0_i32_0 : i32, i32, i32
  }
}

</mosaic_0001>

<bundles_post_ra>
// kernel: tpu_custom_call.1
= control target key start
LH: loop header
LB: loop body
LE: loop exit
PB: predicated region body
PF: predicated region fallthrough
CT: control target
= control target key end

     0   :  { %s3678_s0 = inlined_call_operand.hbm [shape: f32[2,16,128], index: 0, kind: input, shape index: {}]   ;;  %s3679_s1 = inlined_call_operand.hbm [shape: bf16[2,128,384], index: 1, kind: input, shape index: {}]   ;;  %s3680_s2 = inlined_call_operand.hbm [shape: bf16[2,128,128], index: 2, kind: input, shape index: {}]   ;;  %s3681_s3 = inlined_call_operand.hbm [shape: bf16[2,128,256], index: 3, kind: input, shape index: {}]   ;;  %s3682_s4 = inlined_call_operand.hbm [shape: bf16[2,256,128], index: 4, kind: input, shape index: {}]   ;;  %s3683_s5 = inlined_call_operand.vmem [shape: f32[2,6,128], index: 5, kind: input, shape index: {}]   ;;  %s3684_s6 = inlined_call_operand.vmem [shape: f32[2,1,256], index: 6, kind: input, shape index: {}]   ;;  %s3685_s7 = inlined_call_operand.vmem [shape: f32[2,128], index: 7, kind: input, shape index: {}]   ;;  %s3686_s8 = inlined_call_operand.hbm [shape: f32[2,16,128], index: 8, kind: output, shape index: {}]  }
   0x1   :  { %3709 = sst [smem:[#allocation29_spill]] %s3679_s1 }
   0x2   :  { %3710 = sst [smem:[#allocation30_spill]] %s3681_s3 }
   0x3   :  { %3711 = sst [smem:[#allocation31_spill]] %s3683_s5 }
   0x4   :  { %3712 = sst [smem:[#allocation32_spill]] %s3684_s6 }
   0x5   :  { %3713 = sst [smem:[#allocation33_spill]] %s3685_s7 }
   0x6   :  { %3714 = sst [smem:[#allocation34_spill]] %s3686_s8 }
   0x7   :  { %13 = vsyncpa [#allocation4], 0 }
   0x8   :  { %15 = vsyncpa [#allocation4 + $0x1], 0 }
   0x9   :  { %16 = vsyncpa [#allocation7], 0 }
   0xa   :  { %18 = vsyncpa [#allocation7 + $0x1], 0 }
   0xb   :  { %19 = vsyncpa [#allocation10], 0 }
   0xc   :  { %21 = vsyncpa [#allocation10 + $0x1], 0 }
   0xd   :  { %22 = vsyncpa [#allocation5], 0 }
   0xe   :  { %24 = vsyncpa [#allocation5 + $0x1], 0  ;;  %s2973_s27 = smov 0   ;;  %s2975_s28 = smov 0  }
   0xf   :  { %s2977_s29 = smov 0   ;;  %s2979_s30 = smov 0  }
  0x10   :  { %s2981_s9 = smov 0   ;;  %s2983_s10 = smov 0  }
  0x11   :  { %s2985_s11 = smov 0   ;;  %s2987_s12 = smov 0  }
  0x12   :  { %s2989_s13 = smov 0   ;;  %s2991_s14 = smov 0  }
  0x13   :  { %s2993_s15 = smov 0  }
  0x14 LB: > { %3715 = sst [smem:[#allocation17_spill]] %s2870_s28  ;;  %s39_s16 = sadd.s32 1, %s2898_s13  ;;  %s2906_s15 = sphi %s2993_s15, %s30_s15   ;;  %s2902_s14 = sphi %s2991_s14, %s3771_s14   ;;  %s2898_s13 = sphi %s2989_s13, %s3775_s13   ;;  %s2894_s12 = sphi %s2987_s12, %s3769_s12   ;;  %s2890_s11 = sphi %s2985_s11, %s3774_s11   ;;  %s2886_s10 = sphi %s2983_s10, %s3768_s10   ;;  %s2882_s9 = sphi %s2981_s9, %s3773_s9   ;;  %s2878_s30 = sphi %s2979_s30, %s3772_s30   ;;  %s2874_s29 = sphi %s2977_s29, %s3766_s29   ;;  %s2870_s28 = sphi %s2975_s28, %s3765_s28   ;;  %s2866_s27 = sphi %s2973_s27, %s3764_s27  }
  0x15   : > { %3716 = sst [smem:[#allocation18_spill]] %s2874_s29  ;;  %p3692_p0 = scmp.eq.s32.totalorder %s2906_s15, 0 }
  0x16   : > { %3717 = sst [smem:[#allocation19_spill]] %s2886_s10  ;;  %p3030_p1 = scmp.ge.s32.totalorder %s39_s16, 2 }
  0x17   : > { %3718 = sst [smem:[#allocation20_spill]] %s2890_s11  ;;  %s75_s18 = sadd.s32 1, %s2874_s29 }
  0x18   : > { %3719 = sst [smem:[#allocation21_spill]] %s2894_s12  ;;  %p82_p2 = scmp.ne.s32.totalorder %s2874_s29, %s2870_s28 }
  0x19   : > { %3720 = sst [smem:[#allocation22_spill]] %s2902_s14  ;;  %s3777_s16 = smov (%p3030_p1, %s39_s16), 0 }
  0x1a   : > { %s3721_s17 = scalar_select %p3030_p1, 1, 0 }
  0x1b   : > { %3722 = sst [smem:[#allocation23_spill]] %s3777_s16  ;;  %p84_p4 = por %p82_p2, %p3692_p0 }
  0x1c   : > { %s72_s19 = ssub.s32 %s2898_s13, %s3777_s16  ;;  %p3690_p5 = scmp.lt.s32.totalorder %s2906_s15, 4 }
  0x1d   : > { %p73_p6 = scmp.eq.s32.totalorder %s72_s19, 0  ;;  %s3691_s20 = sand.u32 1, %s2906_s15  }
  0x1e   : > { %s3050_s21 = sand.u32 1, %s2874_s29   ;;  %p3058_p7 = pnand %p3690_p5, %p84_p4 }
  0x1f   : > { %s3053_s22 = scalar_select %p73_p6, %s2874_s29, %s75_s18  }
  0x20   : > { %s2355_s23 = smul.u32 192, %s3050_s21  ;;  %s3725_s1 = sld [smem:[#allocation29_spill]] }
  0x21   : > { %3723 = sst [smem:[#allocation24_spill]] %s3053_s22  ;;  %s2356_s25 = smul.u32 3072, %s2898_s13 }
  0x22   : > { %s3724_s24 = scalar_select %p3058_p7, 1, 0 }
  0x23   : > { %s317_s19 = scalar_lea.vmem [#allocation6], %s2355_s23  ;;  %s3072_s22 = scalar_lea.sflag [#allocation7], %s3691_s20 }
  0x24   : > { %s324_s18 = sshll.u32 %s317_s19, 4  ;;  %p3078_p9 = pneg %p3058_p7  ;;  %s3068_s18 = int_to_ptr.vmem [resolvable:$true] %s324_s18 }
  0x26   : > { %s3066_s16 = scalar_lea.hbm %s3725_s1, %s2356_s25  ;;  %s2631_s23 = scalar_lea.hbm %s3725_s1, 6144 }
  0x27   : > { %s2626_s29 = scalar_lea.hbm %s3066_s16, 3072  ;;  %p2632_p12 = scmp.lt.u32.totalorder %s3066_s16, %s3725_s1 }
  0x28   : > { %p2627_p8 = scmp.ne.s32.totalorder %s3066_s16, %s2626_s29  ;;  %p2633_p13 = scmp.lt.u32.totalorder %s2631_s23, %s2626_s29 }
  0x29   : > { %p2635_p4 = scmp.lt.u32.totalorder %s2626_s29, %s3066_s16 }
  0x2a   : > { %p2629_p10 = pnand %p3078_p9, %p2627_p8  ;;  %p2634_p2 = por %p2633_p13, %p2632_p12 }
  0x2c   : > { %p2630_p11 = pneg %p2629_p10  ;;  %p2636_p6 = por %p2635_p4, %p2634_p2 }
  0x2e   : > { %p2637_p5 = pnand %p2636_p6, %p2630_p11 }
  0x30   : > { %2640 = shalt.err (!%p2637_p5)
}
  0x31   : > { %s2641_s20 = scalar_lea.vmem %s3068_s18, 3072  ;;  %s2908_s8 = smov [#allocation6]  }
  0x32   : > { %p2642_p8 = scmp.ne.s32.totalorder %s3068_s18, %s2641_s20  ;;  %s2646_s25 = sshll.u32 %s2908_s8, 4  ;;  %s2647_s25 = int_to_ptr.vmem [resolvable:$false] %s2646_s25 }
  0x33   : > { %s2648_s26 = scalar_lea.vmem %s2647_s25, 6144  ;;  %p2649_p0 = scmp.lt.s32.totalorder %s3068_s18, %s2647_s25 }
  0x34   : > { %p2644_p10 = pnand %p2642_p8, %p3078_p9  ;;  %p2650_p1 = scmp.lt.s32.totalorder %s2648_s26, %s2641_s20 }
  0x36   : > { %p2645_p3 = pneg %p2644_p10  ;;  %p2651_p12 = por %p2650_p1, %p2649_p0 }
  0x38   : > { %p2652_p13 = pnand %p2651_p12, %p2645_p3 }
  0x3a   : > { %2655 = shalt.err (!%p2652_p13)
}
  0x3b   : > { %s2909_s29 = smov 192   ;;  %s2910_s23 = smov 12  }
  0x3c   : > { %2376 = dma.hbm_to_vmem [thread:$0]  (!%p3058_p7), %s3066_s16, 3072, %s3068_s18, %s3072_s22, %s2909_s29, %s2909_s29, %s2910_s23  }
  0x3d   : > { %p2119_p5 = scmp.ge.s32.totalorder %s2906_s15, 1  ;;  %p409_p11 = scmp.lt.s32.totalorder %s2906_s15, 5 }
  0x3e   : > { %s3695_s19 = sshll.u32 %s3050_s21, 7  ;;  %s2208_s8 = sshll.u32 %s2898_s13, 11 }
  0x3f   : > { %p3104_p0 = pnand %p2119_p5, %p409_p11  ;;  %s3729_s3 = sld [smem:[#allocation30_spill]] }
  0x40   : > { %s359_s7 = scalar_lea.vmem [#allocation9], %s3695_s19  ;;  %s3122_s23 = scalar_lea.hbm %s3682_s4, %s2208_s8 }
  0x41   : > { %s3727_s20 = scalar_select %p3104_p0, 1, 0 }
  0x42   : > { %s366_s16 = sshll.u32 %s359_s7, 4  ;;  %s3730_s6 = sand.u32 1, %s2906_s15   ;;  %s3117_s16 = int_to_ptr.vmem [resolvable:$true] %s366_s16 }
  0x43   : > { %3728 = sst [smem:[#allocation25_spill]] %s3727_s20  ;;  %s3126_s5 = scalar_lea.sflag [#allocation10], %s3730_s6 }
  0x45   : > { %s3113_s1 = scalar_lea.hbm %s3729_s3, %s2208_s8  ;;  %s2661_s19 = scalar_lea.hbm %s3729_s3, 4096 }
  0x46   : > { %s2656_s25 = scalar_lea.hbm %s3113_s1, 2048  ;;  %p2662_p4 = scmp.lt.u32.totalorder %s3113_s1, %s3729_s3 }
  0x47   : > { %p2657_p1 = scmp.ne.s32.totalorder %s3113_s1, %s2656_s25  ;;  %p2663_p6 = scmp.lt.u32.totalorder %s2661_s19, %s2656_s25 }
  0x48   : > { %p2665_p10 = scmp.lt.u32.totalorder %s2656_s25, %s3113_s1 }
  0x49   : > { %p2659_p3 = pnand %p2657_p1, %p3078_p9  ;;  %p2664_p8 = por %p2663_p6, %p2662_p4 }
  0x4b   : > { %p2660_p2 = pneg %p2659_p3  ;;  %p2666_p12 = por %p2665_p10, %p2664_p8 }
  0x4d   : > { %p2667_p13 = pnand %p2666_p12, %p2660_p2 }
  0x4f   : > { %2670 = shalt.err (!%p2667_p13)
}
  0x50   : > { %s2671_s6 = scalar_lea.vmem %s3117_s16, 2048  ;;  %s2911_s11 = smov [#allocation9]  }
  0x51   : > { %p2672_p5 = scmp.ne.s32.totalorder %s3117_s16, %s2671_s6  ;;  %s2676_s8 = sshll.u32 %s2911_s11, 4  ;;  %s2677_s8 = int_to_ptr.vmem [resolvable:$false] %s2676_s8 }
  0x52   : > { %s2678_s20 = scalar_lea.vmem %s2677_s8, 4096  ;;  %p2679_p3 = scmp.lt.s32.totalorder %s3117_s16, %s2677_s8 }
  0x53   : > { %p2674_p11 = pnand %p2672_p5, %p3078_p9  ;;  %p2680_p0 = scmp.lt.s32.totalorder %s2678_s20, %s2671_s6 }
  0x55   : > { %p2675_p1 = pneg %p2674_p11  ;;  %p2681_p4 = por %p2680_p0, %p2679_p3 }
  0x57   : > { %p2682_p6 = pnand %p2681_p4, %p2675_p1 }
  0x59   : > { %2685 = shalt.err (!%p2682_p6)
}
  0x5a   : > { %s3697_s19 = smov 128   ;;  %s3698_s18 = smov 8  }
  0x5b   : > { %2382 = dma.hbm_to_vmem [thread:$0]  (!%p3058_p7), %s3113_s1, 2048, %s3117_s16, %s3126_s5, %s3697_s19, %s3697_s19, %s3698_s18  }
  0x5c   : > { %s3731_s29 = sshll.u32 %s3050_s21, 7  ;;  %s3158_s7 = sadd.s32 4294967295, %s2906_s15  }
  0x5d   : > { %s380_s25 = scalar_lea.vmem [#allocation11], %s3731_s29  ;;  %3732 = sst [smem:[#allocation26_spill]] %s3158_s7 }
  0x5e   : > { %s387_s26 = sshll.u32 %s380_s25, 4  ;;  %s2103_s6 = sadd.s32 4294967294, %s2906_s15   ;;  %s3155_s26 = int_to_ptr.vmem [resolvable:$true] %s387_s26 }
  0x5f   : > { %s42_s11 = sadd.s32 1, %s2902_s14  ;;  %s49_s8 = sadd.s32 1, %s2886_s10 }
  0x60   : > { %p3733_p0 = scmp.ne.s32.totalorder %s3721_s17, 0  ;;  %p56_p2 = scmp.ne.s32.totalorder %s2886_s10, %s2882_s9 }
  0x61   : > { %p62_p8 = scmp.ne.s32.totalorder %s2882_s9, %s2878_s30  ;;  %p63_p12 = scmp.eq.s32.totalorder %s3158_s7, 0 }
  0x62   : > { %s3779_s11 = smov (!%p3733_p0, %s42_s11), %s2902_s14  ;;  %p3734_p13 = scmp.eq.s32.totalorder %s2906_s15, 0 }
  0x63   : > { %p44_p10 = scmp.ge.s32.totalorder %s3779_s11, 2  ;;  %p263_p11 = scmp.eq.s32.totalorder %s3158_s7, 3 }
  0x64   : > { %p3173_p5 = por %p3734_p13, %p56_p2  ;;  %p3183_p1 = por %p63_p12, %p62_p8 }
  0x65   : > { %s3781_s11 = smov (%p44_p10, %s3779_s11), 0  ;;  %p3738_p3 = scmp.ne.s32.totalorder %s2870_s28, %s2866_s27 }
  0x66   : > { %3736 = sst [smem:[#allocation27_spill]] %s3781_s11  ;;  %s46_s20 = ssub.s32 %s2902_s14, %s3781_s11 }
  0x67   : > { %s3737_s17 = scalar_select %p3183_p1, 1, 0 }
  0x68   : > { %p3190_p4 = por %p3738_p3, %p63_p12  ;;  %p3196_p6 = por %p263_p11, %p56_p2 }
  0x69   : > { %p47_p0 = scmp.eq.s32.totalorder %s46_s20, 0  ;;  %p269_p10 = scmp.eq.s32.totalorder %s2103_s6, 3 }
  0x6a   : > { %s3739_s16 = scalar_select %p3190_p4, 1, 0 }
  0x6b   : > { %s3740_s29 = scalar_select %p3196_p6, 1, 0 }
  0x6c   : > { %s292_s25 = sand.u32 1, %s2886_s10   ;;  %s2206_s19 = sshll.u32 %s2902_s14, 8 }
  0x6d   : > { %s3203_s18 = scalar_select %p47_p0, %s2886_s10, %s49_s8  }
  0x6e   : > { %p3208_p13 = por %p269_p10, %p62_p8  ;;  %s2106_s27 = sshll.u32 %s292_s25, 4 }
  0x6f   : > { %3741 = sst [smem:[#allocation28_spill]] %s3203_s18  ;;  %s3215_s11 = scalar_lea.hbm %s3678_s0, %s2206_s19 }
  0x70   : > { %s3742_s3 = scalar_select %p3208_p13, 1, 0 }
  0x71   : > { %p3743_p2 = scmp.lt.s32.totalorder %s2906_s15, 4  ;;  %s296_s8 = scalar_lea.vmem [#allocation3], %s2106_s27 }
  0x72   : > { %s303_s20 = sshll.u32 %s296_s8, 4  ;;  %s2110_s14 = sshll.u32 %s3050_s21, 6  ;;  %s3226_s20 = int_to_ptr.vmem [resolvable:$true] %s303_s20 }
  0x73   : > { %p3221_p12 = pnand %p3743_p2, %p3173_p5  ;;  %s3228_s28 = scalar_lea.sflag [#allocation4], %s292_s25 }
  0x74   : > { %s2686_s19 = scalar_lea.hbm %s3215_s11, 256  ;;  %s2691_s18 = scalar_lea.hbm %s3678_s0, 512 }
  0x75   : > { %p2687_p8 = scmp.ne.s32.totalorder %s3215_s11, %s2686_s19  ;;  %p2688_p11 = pneg %p3221_p12 }
  0x76   : > { %p2692_p0 = scmp.lt.u32.totalorder %s3215_s11, %s3678_s0  ;;  %p2693_p10 = scmp.lt.u32.totalorder %s2691_s18, %s2686_s19 }
  0x77   : > { %p2689_p3 = pnand %p2688_p11, %p2687_p8  ;;  %p2695_p13 = scmp.lt.u32.totalorder %s2686_s19, %s3215_s11 }
  0x78   : > { %p2694_p2 = por %p2693_p10, %p2692_p0 }
  0x79   : > { %p2690_p5 = pneg %p2689_p3 }
  0x7a   : > { %p2696_p6 = por %p2695_p13, %p2694_p2 }
  0x7c   : > { %p2697_p4 = pnand %p2696_p6, %p2690_p5 }
  0x7e   : > { %2700 = shalt.err (!%p2697_p4)
}
  0x7f   : > { %s2701_s25 = scalar_lea.vmem %s3226_s20, 256  ;;  %s2914_s8 = smov [#allocation3]  }
  0x80   : > { %p2702_p8 = scmp.ne.s32.totalorder %s3226_s20, %s2701_s25  ;;  %s2706_s7 = sshll.u32 %s2914_s8, 4  ;;  %s2707_s7 = int_to_ptr.vmem [resolvable:$false] %s2706_s7 }
  0x81   : > { %s2708_s10 = scalar_lea.vmem %s2707_s7, 512  ;;  %p2709_p7 = scmp.lt.s32.totalorder %s3226_s20, %s2707_s7 }
  0x82   : > { %p2704_p3 = pnand %p2702_p8, %p2688_p11  ;;  %p2710_p0 = scmp.lt.s32.totalorder %s2708_s10, %s2701_s25 }
  0x84   : > { %p2705_p1 = pneg %p2704_p3  ;;  %p2711_p10 = por %p2710_p0, %p2709_p7 }
  0x86   : > { %p2712_p13 = pnand %p2711_p10, %p2705_p1 }
  0x88   : > { %2715 = shalt.err (!%p2712_p13)
}
  0x89   : > { %s3745_s18 = smov 8   ;;  %s3746_s19 = smov 128  }
  0x8a   : > { %2373 = dma.hbm_to_vmem [thread:$0]  (!%p3221_p12), %s3215_s11, 256, %s3226_s20, %s3228_s28, %s3746_s19, %s3746_s19, %s3745_s18  }
  0x8b   : > { %s2207_s1 = sshll.u32 %s2898_s13, 10  ;;  %s338_s6 = scalar_lea.vmem [#allocation8], %s2110_s14 }
  0x8c   : > { %s3263_s25 = scalar_lea.hbm %s3680_s2, %s2207_s1  ;;  %s345_s7 = sshll.u32 %s338_s6, 4  ;;  %s3267_s7 = int_to_ptr.vmem [resolvable:$true] %s345_s7 }
  0x8d   : > { %s2716_s10 = scalar_lea.hbm %s3263_s25, 1024  ;;  %s2721_s28 = scalar_lea.hbm %s3680_s2, 2048 }
  0x8e   : > { %p2717_p7 = scmp.ne.s32.totalorder %s3263_s25, %s2716_s10  ;;  %p2722_p6 = scmp.lt.u32.totalorder %s3263_s25, %s3680_s2 }
  0x8f   : > { %p2723_p12 = scmp.lt.u32.totalorder %s2721_s28, %s2716_s10  ;;  %p2725_p5 = scmp.lt.u32.totalorder %s2716_s10, %s3263_s25 }
  0x90   : > { %p2719_p1 = pnand %p2717_p7, %p3078_p9 }
  0x91   : > { %p2724_p11 = por %p2723_p12, %p2722_p6 }
  0x92   : > { %p2720_p4 = pneg %p2719_p1 }
  0x93   : > { %p2726_p2 = por %p2725_p5, %p2724_p11 }
  0x95   : > { %p2727_p8 = pnand %p2726_p2, %p2720_p4 }
  0x97   : > { %2730 = shalt.err (!%p2727_p8)
}
  0x98   : > { %s2731_s14 = scalar_lea.vmem %s3267_s7, 1024  ;;  %s2915_s21 = smov [#allocation8]  }
  0x99   : > { %p2732_p3 = scmp.ne.s32.totalorder %s3267_s7, %s2731_s14  ;;  %s2736_s1 = sshll.u32 %s2915_s21, 4  ;;  %s2737_s1 = int_to_ptr.vmem [resolvable:$false] %s2736_s1 }
  0x9a   : > { %s2738_s27 = scalar_lea.vmem %s2737_s1, 2048  ;;  %p2739_p13 = scmp.lt.s32.totalorder %s3267_s7, %s2737_s1 }
  0x9b   : > { %p2734_p0 = pnand %p2732_p3, %p3078_p9  ;;  %p2740_p7 = scmp.lt.s32.totalorder %s2738_s27, %s2731_s14 }
  0x9d   : > { %p2735_p10 = pneg %p2734_p0  ;;  %p2741_p1 = por %p2740_p7, %p2739_p13 }
  0x9f   : > { %p2742_p6 = pnand %p2741_p1, %p2735_p10 }
  0xa1   : > { %2745 = shalt.err (!%p2742_p6)
}
  0xa2   : > { %s2916_s8 = smov 64   ;;  %s2917_s6 = smov 4  }
  0xa3   : > { %p3747_p4 = scmp.ne.s32.totalorder %s3724_s24, 0  ;;  %s2746_s10 = scalar_lea.hbm %s3122_s23, 2048 }
  0xa4   : > { %p2747_p12 = scmp.ne.s32.totalorder %s3122_s23, %s2746_s10  ;;  %s2751_s28 = scalar_lea.hbm %s3682_s4, 4096 }
  0xa5   : > { %2379 = dma.hbm_to_vmem [thread:$0]  (!%p3747_p4), %s3263_s25, 1024, %s3267_s7, %s3072_s22, %s2916_s8, %s2916_s8, %s2917_s6  }
  0xa6   : > { %p2749_p11 = pnand %p2747_p12, %p3078_p9  ;;  %p2752_p2 = scmp.lt.u32.totalorder %s3122_s23, %s3682_s4 }
  0xa7   : > { %p2753_p8 = scmp.lt.u32.totalorder %s2751_s28, %s2746_s10  ;;  %p2755_p0 = scmp.lt.u32.totalorder %s2746_s10, %s3122_s23 }
  0xa8   : > { %p2750_p5 = pneg %p2749_p11 }
  0xa9   : > { %p2754_p3 = por %p2753_p8, %p2752_p2 }
  0xab   : > { %p2756_p10 = por %p2755_p0, %p2754_p3 }
  0xad   : > { %p2757_p13 = pnand %p2756_p10, %p2750_p5 }
  0xaf   : > { %2760 = shalt.err (!%p2757_p13)
}
  0xb0   : > { %s2761_s22 = scalar_lea.vmem %s3155_s26, 2048  ;;  %s2918_s25 = smov [#allocation11]  }
  0xb1   : > { %p2762_p7 = scmp.ne.s32.totalorder %s3155_s26, %s2761_s22  ;;  %s2766_s7 = sshll.u32 %s2918_s25, 4  ;;  %s2767_s7 = int_to_ptr.vmem [resolvable:$false] %s2766_s7 }
  0xb2   : > { %s2768_s14 = scalar_lea.vmem %s2767_s7, 4096  ;;  %p2769_p12 = scmp.lt.s32.totalorder %s3155_s26, %s2767_s7 }
  0xb3   : > { %p2764_p1 = pnand %p2762_p7, %p3078_p9  ;;  %p2770_p11 = scmp.lt.s32.totalorder %s2768_s14, %s2761_s22 }
  0xb5   : > { %p2765_p6 = pneg %p2764_p1  ;;  %p2771_p2 = por %p2770_p11, %p2769_p12 }
  0xb7   : > { %p2772_p8 = pnand %p2771_p2, %p2765_p6 }
  0xb9   : > { %2775 = shalt.err (!%p2772_p8)
}
  0xba   : > { %2385 = dma.hbm_to_vmem [thread:$0]  (!%p3747_p4), %s3122_s23, 2048, %s3155_s26, %s3126_s5, %s2916_s8, %s2916_s8, %s2917_s6  }
  0xbb   : > { %s3748_s12 = sld [smem:[#allocation25_spill]] }
  0xc1   : > { %p3749_p9 = scmp.ne.s32.totalorder %s3748_s12, 0 }
  0xc2   : > { %s3322_s21 = sand.u32 (!%p3749_p9), 1, %s2882_s9   ;;  %p3750_p5 = scmp.ne.s32.totalorder (!%p3749_p9), %s3737_s17, 0 }
  0xc3   : > { %413 = sbr.rel (%p3749_p9) target bundleno = 3234 (0xca2), region = 52  ;;  %s2120_s1 = sshll.u32 (!%p3749_p9), %s3322_s21, 4 }
  0xc4   : > { %s416_s27 = scalar_lea.sflag (!%p3749_p9), [#allocation4], %s3322_s21  ;;  %s419_s10 = scalar_lea.vmem (!%p3749_p9), [#allocation3], %s2120_s1 }
  0xca   : > { %2849 = dma.done.wait (%p3750_p5), %s416_s27, 256  }
  0xcb   : > { %2851 = vsyncadd (%p3750_p5), %s416_s27, 4294967040  ;;  %s3751_s24 = sld [smem:[#allocation26_spill]]  ;;  %s3752_s11 = sld [smem:[#allocation17_spill]] }
  0xcc   : > { %p3753_p4 = scmp.ne.s32.totalorder %s3739_s16, 0 }
  0xd1   : > { %s424_s5 = sand.u32 1, %s3751_s24   ;;  %s426_s23 = sand.u32 1, %s3752_s11  }
  0xd2   : > { %s2357_s26 = smul.u32 192, %s426_s23  ;;  %s425_s8 = scalar_lea.sflag [#allocation7], %s424_s5 }
  0xd4   : > { %s3332_s6 = scalar_lea.vmem [#allocation6], %s2357_s26 }
  0xd5   : > { %2853 = dma.done.wait (%p3753_p4), %s425_s8, 4096  }
  0xd6   : > { %2855 = vsyncadd (%p3753_p4), %s425_s8, 4294963200  ;;  %s2121_s20 = sshll.u32 %s426_s23, 6  ;;  %s2122_s28 = sshll.u32 %s426_s23, 7 }
  0xd7   : > { %s3338_s18 = scalar_lea.vmem [#allocation8], %s2121_s20  ;;  %s443_s17 = scalar_lea.sflag [#allocation10], %s424_s5 }
  0xd8   : > { %s3340_s19 = scalar_lea.vmem [#allocation9], %s2122_s28 }
  0xd9   : > { %2857 = dma.done.wait (%p3753_p4), %s443_s17, 4096  }
  0xda   : > { %2859 = vsyncadd (%p3753_p4), %s443_s17, 4294963200  ;;  %s3754_s22 = sld [smem:[#allocation20_spill]]  ;;  %s3755_s24 = sld [smem:[#allocation31_spill]] }
  0xdb   : > { %s3756_s26 = sld [smem:[#allocation32_spill]]  ;;  %s3358_s20 = scalar_lea.vmem [#allocation11], %s2122_s28 }
  0xdc   : > { %s3360_s16 = scalar_lea.vmem [#allocation12], %s2120_s1 }
  0xe0   : > { %p516_p3 = scmp.lt.s32.totalorder %s3754_s22, 1  ;;  %p2127_p0 = scmp.ne.s32.totalorder %s3754_s22, 0 }
  0xe1   : > { %v529_v0 = vld [vmem:[%s419_s10] sm:$0xff] (!%p2127_p0)  ;;  %v530_v1 = vld [vmem:[%s419_s10 + $0x8] sm:$0xff] (!%p2127_p0) }
  0xe2   : > { %s517_s25 = scalar_select %p516_p3, %s3754_s22, 1 }
  0xe3   : > { %528 = sbr.rel (%p2127_p0) target bundleno = 234 (0xea), region = 76  ;;  %531 = vst [vmem:[%s3360_s16] sm:$0xff] (!%p2127_p0), %v529_v0  ;;  %532 = vst [vmem:[%s3360_s16 + $0x8] sm:$0xff] (!%p2127_p0), %v530_v1 }
  0xe4   : > { %s2125_s7 = sshll.u32 %s517_s25, 3  ;;  %s2126_s14 = sshll.u32 %s517_s25, 1 }
  0xe5   : > { %s3351_s11 = scalar_lea.vmem %s3755_s24, %s2125_s7  ;;  %s3356_s8 = scalar_lea.vmem %s3756_s26, %s2126_s14 }
  0xea PF: > { %v3366_v2 = vld [vmem:[%s3360_s16] sm:$0xff]  ;;  %v3369_v3 = vld [vmem:[%s3360_s16 + $0x8] sm:$0xff]  ;;  %v2919_v6 = vmov 0.0   ;;  %v2920_v32 = vmov 0   ;;  %vm2921_vm0 = vmmov 0   ;;  %v560_v42 = vlaneseq  ;;  %s2922_s1 = smov 96  }
  0xeb   : > { %537 = vadd.xlane.f32.xlu0 %v3366_v2  ;;  %v2494_v4 = vld [vmem:[%s3332_s6 + $0x4] ss:$12 sps:$4 sm:$0xff]   ;;  %v2496_v5 = vld [vmem:[%s3332_s6] ss:$12 sps:$4 sm:$0xff]   ;;  %2267 = vmatprep.subr.bf16.mxu1 %v2919_v6  ;;  %v2497_v7 = vld [vmem:[%s3332_s6 + $0x8] ss:$12 sps:$4 sm:$0xff]  }
  0xec   : > { %v2498_v8 = vld [vmem:[%s3332_s6 + $0x1c] ss:$12 sps:$4 sm:$0xff]   ;;  %733 = vmatprep.subr.bf16.mxu0 %v2494_v4  ;;  %2268 = vmatpush3.bf16.msra.mxu1 %v2497_v7  ;;  %v2500_v17 = vld [vmem:[%s3332_s6 + $0x18] ss:$12 sps:$4 sm:$0xff]   ;;  %v2501_v18 = vld [vmem:[%s3332_s6 + $0x20] ss:$12 sps:$4 sm:$0xff]  }
  0xed   : > { %734 = vmatpush1.bf16.msra.mxu0 %v2496_v5  ;;  %2269 = vmatprep.subr.bf16.mxu1 %v2919_v6  ;;  %v2502_v19 = vld [vmem:[%s3332_s6 + $0x34] ss:$12 sps:$4 sm:$0xff]   ;;  %v2504_v20 = vld [vmem:[%s3332_s6 + $0x30] ss:$12 sps:$4 sm:$0xff]   ;;  %v2505_v21 = vld [vmem:[%s3332_s6 + $0x38] ss:$12 sps:$4 sm:$0xff]  }
  0xee   : > { %735 = vmatprep.subr.bf16.mxu0 %v2498_v8  ;;  %v2506_v22 = vld [vmem:[%s3332_s6 + $0x4c] ss:$12 sps:$4 sm:$0xff]   ;;  %v2508_v23 = vld [vmem:[%s3332_s6 + $0x48] ss:$12 sps:$4 sm:$0xff]   ;;  %v2509_v24 = vld [vmem:[%s3332_s6 + $0x50] ss:$12 sps:$4 sm:$0xff]   ;;  %765 = vmatprep.mubr.bf16.mxu0 %v2920_v32 }
  0xef   : > { %539 = vadd.xlane.f32.xlu0 %v3369_v3  ;;  %v2510_v25 = vld [vmem:[%s3332_s6 + $0x64] ss:$12 sps:$4 sm:$0xff]   ;;  %v2512_v26 = vld [vmem:[%s3332_s6 + $0x60] ss:$12 sps:$4 sm:$0xff]   ;;  %v2513_v27 = vld [vmem:[%s3332_s6 + $0x68] ss:$12 sps:$4 sm:$0xff]   ;;  %2283 = vmatprep.mubr.msk.bf16.mxu1 %vm2921_vm0, %v2919_v6 }
  0xf0   : > { %2270 = vmatpush3.bf16.msra.mxu1 %v2501_v18  ;;  %v2514_v28 = vld [vmem:[%s3332_s6 + $0x7c] ss:$12 sps:$4 sm:$0xff]   ;;  %v2516_v29 = vld [vmem:[%s3332_s6 + $0x78] ss:$12 sps:$4 sm:$0xff]   ;;  %v2517_v30 = vld [vmem:[%s3332_s6 + $0x80] ss:$12 sps:$4 sm:$0xff]  }
  0xf1   : > { %736 = vmatpush1.bf16.msra.mxu0 %v2500_v17  ;;  %2271 = vmatprep.subr.bf16.mxu1 %v2919_v6  ;;  %v2518_v31 = vld [vmem:[%s3332_s6 + $0x94] ss:$12 sps:$4 sm:$0xff]   ;;  %v2520_v33 = vld [vmem:[%s3332_s6 + $0x90] ss:$12 sps:$4 sm:$0xff]   ;;  %v2521_v34 = vld [vmem:[%s3332_s6 + $0x98] ss:$12 sps:$4 sm:$0xff]  }
  0xf2   : > { %737 = vmatprep.subr.bf16.mxu0 %v2502_v19  ;;  %v2522_v35 = vld [vmem:[%s3332_s6 + $0xac] ss:$12 sps:$4 sm:$0xff]   ;;  %v2524_v36 = vld [vmem:[%s3332_s6 + $0xa8] ss:$12 sps:$4 sm:$0xff]   ;;  %v2525_v37 = vld [vmem:[%s3332_s6 + $0xb0] ss:$12 sps:$4 sm:$0xff]  }
  0xf3   : > { %v3420_v45 = vshrl.u32 %v560_v42, 7  ;;  %v3426_v47 = vld [vmem:[%s3351_s11] sm:$0x3f]  ;;  %vm822_vm1 = vcmask 261120   ;;  %vm870_vm2 = vcmask 130048   ;;  %s2923_s10 = smov 64  }
  0xf4   : > { %2272 = vmatpush3.bf16.msra.mxu1 %v2505_v21  ;;  %s2924_s6 = smov 32   ;;  %vm1072_vm3 = vcmask 523520   ;;  %vm1204_vm4 = vcmask 785920   ;;  %vm1336_vm5 = vcmask 1048320   ;;  %s3757_s28 = sld [smem:[#allocation20_spill]] }
  0xf5   : > { %738 = vmatpush1.bf16.msra.mxu0 %v2504_v20  ;;  %2273 = vmatprep.subr.bf16.mxu1 %v2919_v6  ;;  %v3423_v46 = vsub.s32 0, %v3420_v45  ;;  %v3432_v51 = vsub.s32 1, %v3420_v45 }
  0xf6   : > { %739 = vmatprep.subr.bf16.mxu0 %v2506_v22 }
  0xf7   : > { %v563_v50 = vrot.slane %v3426_v47, %v3423_v46  ;;  %v569_v55 = vrot.slane %v3426_v47, %v3432_v51 }
  0xf8   : > { %2274 = vmatpush3.bf16.msra.mxu1 %v2509_v24 }
  0xf9   : > { %740 = vmatpush1.bf16.msra.mxu0 %v2508_v23  ;;  %2275 = vmatprep.subr.bf16.mxu1 %v2919_v6 }
  0xfa   : > { %741 = vmatprep.subr.bf16.mxu0 %v2510_v25  ;;  %p2200_p10 = scmp.ne.s32.totalorder %s3757_s28, 1 }
  0xfc   : > { %2276 = vmatpush3.bf16.msra.mxu1 %v2513_v27 }
  0xfd   : > { %742 = vmatpush1.bf16.msra.mxu0 %v2512_v26  ;;  %2277 = vmatprep.subr.bf16.mxu1 %v2919_v6 }
  0xfe   : > { %743 = vmatprep.subr.bf16.mxu0 %v2514_v28 }
 0x100   : > { %2278 = vmatpush3.bf16.msra.mxu1 %v2517_v30 }
 0x101   : > { %744 = vmatpush1.bf16.msra.mxu0 %v2516_v29  ;;  %2279 = vmatprep.subr.bf16.mxu1 %v2919_v6 }
 0x102   : > { %745 = vmatprep.subr.bf16.mxu0 %v2518_v31 }
 0x104   : > { %2280 = vmatpush3.bf16.msra.mxu1 %v2521_v34 }
 0x105   : > { %746 = vmatpush1.bf16.msra.mxu0 %v2520_v33  ;;  %2281 = vmatprep.subr.bf16.mxu1 %v2919_v6 }
 0x106   : > { %747 = vmatprep.subr.bf16.mxu0 %v2522_v35 }
 0x108   : > { %2282 = vmatpush3.bf16.msra.mxu1 %v2525_v37 }
 0x109   : > { %748 = vmatpush1.bf16.msra.mxu0 %v2524_v36  ;;  %2287 = vmatprep.subr.bf16.mxu1 %v2919_v6 }
 0x10a   : > { %2311 = vmatprep.subr.bf16.mxu0 %v2919_v6 }
 0x178   : > { %v538_v9 = vpop.xlane.xlu0 %537 }
 0x179   : > { %v542_v10 = vmul.f32 0.0078125, %v538_v9 }
 0x17b   : > { %v3380_v11 = vsub.f32 %v3366_v2, %v542_v10 }
 0x17c   : > { %v540_v12 = vpop.xlane.xlu0 %539 }
 0x17d   : > { %v543_v13 = vmul.f32 0.0078125, %v540_v12  ;;  %v546_v14 = vmul.f32 %v3380_v11, %v3380_v11 }
 0x17f   : > { %v3385_v15 = vsub.f32 %v3369_v3, %v543_v13  ;;  %548 = vadd.xlane.f32.xlu1 %v546_v14 }
 0x181   : > { %v547_v16 = vmul.f32 %v3385_v15, %v3385_v15 }
 0x183   : > { %550 = vadd.xlane.f32.xlu1 %v547_v16 }
 0x20c   : > { %v549_v38 = vpop.xlane.xlu1 %548 }
 0x20d   : > { %v552_v39 = vmul.f32 0.0078125, %v549_v38 }
 0x20f   : > { %v554_v40 = vadd.f32 1e-05, %v552_v39 }
 0x210   : > { %v551_v41 = vpop.xlane.xlu1 %550 }
 0x211   : > { %2574 = vrsqrt.f32 %v554_v40  ;;  %v553_v43 = vmul.f32 0.0078125, %v551_v41 }
 0x213   : > { %v555_v44 = vadd.f32 1e-05, %v553_v43 }
 0x215   : > { %2576 = vrsqrt.f32 %v555_v44 }
 0x21b   : > { %v2575_v48 = vpop.eup %2574 }
 0x21c   : > { %v558_v49 = vmul.f32 %v2575_v48, %v3380_v11 }
 0x21e   : > { %v564_v54 = vmul.f32 %v563_v50, %v558_v49 }
 0x21f   : > { %v2577_v52 = vpop.eup %2576 }
 0x220   : > { %v559_v53 = vmul.f32 %v2577_v52, %v3385_v15  ;;  %v570_v57 = vadd.f32 %v569_v55, %v564_v54 }
 0x222   : > { %v565_v56 = vmul.f32 %v563_v50, %v559_v53 }
 0x224   : > { %v571_v58 = vadd.f32 %v569_v55, %v565_v56 }
 0x226   : > { %v572_v59 = vpack.c.bf16 %v571_v58, %v570_v57 }
 0x228   : > { %766 = vmatmul.mubr.bf16.vlgmr.msra.gmra.mrb[0].mxu0 %v572_v59  ;;  %2284 = vmatmul.mubr.bf16.vlgmr.msra.gmra.mrb[0].mxu1 %v572_v59 }
 0x229   : > { %2289 = vmatprep.mubr.msk.bf16.mxu1 %vm2921_vm0, %v2919_v6  ;;  %2313 = vmatprep.mubr.msk.bf16.mxu0 %vm2921_vm0, %v2919_v6 }
 0x2fb   : > { %v767_v60 = vpop.f32.mrb[0].mxu0  ;;  %v810_v61 = vpop.f32.mrb[0].mxu1 }
 0x2fc   : > { %v769_v62 = vpop.f32.mrb[1].mxu0  ;;  %v2285_v63 = vpop.f32.mrb[1].mxu1  ;;  %v817_v4 = vmul.f32 0.17677669, %v767_v60 }
 0x2fd   : > { %v771_v0 = vpop.f32.mrb[2].mxu0  ;;  %v813_v1 = vpop.f32.mrb[2].mxu1 }
 0x2fe   : > { %v818_v5 = vmul.f32 0.17677669, %v771_v0  ;;  %v3441_v7 = vpack.c.bf16 %v813_v1, %v810_v61  ;;  %v773_v8 = vpop.f32.mrb[3].mxu0  ;;  %v2286_v9 = vpop.f32.mrb[3].mxu1 }
 0x2ff   : > { %v820_v10 = vpack.c.bf16 %v773_v8, %v769_v62 }
 0x300   : > { %v819_v11 = vpack.c.bf16 %v818_v5, %v817_v4 }
 0x301   : > { %v827_v12 = vsel %vm822_vm1, %v820_v10, 0 }
 0x302   : > { %2288 = vmatpush3.bf16.xpose.msra.mxu1 %v827_v12 }
 0x303   : > { %2293 = vmatprep.subr.bf16.mxu1 %v2919_v6 }
 0x309   : > { %2290 = vmatmul.mubr.msk.bf16.vlgmr.msra.gmra.mrb[4].mxu1 %vm822_vm1, %v819_v11 }
 0x30a   : > { %2294 = vmatpush3.bf16.msra.mxu1 %v3441_v7  ;;  %2295 = vmatprep.mubr.msk.bf16.mxu1 %vm2921_vm0, %v2919_v6 }
 0x30b   : > { %2299 = vmatprep.subr.bf16.mxu1 %v2919_v6 }
 0x3dc   : > { %v863_v13 = vpop.f32.mrb[4].mxu1 }
 0x3dd   : > { %v2291_v14 = vpop.f32.mrb[5].mxu1  ;;  %v871_v15 = vsel %vm870_vm2, %v863_v13, -inf }
 0x3de   : > { %872 = vmax.xlane.f32.xlu0 %v871_v15  ;;  %v866_v16 = vpop.f32.mrb[6].mxu1 }
 0x3df   : > { %v2292_v17 = vpop.f32.mrb[7].mxu1  ;;  %v874_v18 = vsel %vm870_vm2, %v866_v16, -inf }
 0x3e0   : > { %875 = vmax.xlane.f32.xlu1 %v874_v18 }
 0x3f1   : > { %941 = vrot.lane.b32.xlu1 %v819_v11, %s2922_s1 }
 0x3f4   : > { %944 = vrot.lane.b32.xlu0 %v820_v10, %s2922_s1 }
 0x3f5   : > { %1077 = vrot.lane.b32.xlu1 %v820_v10, %s2923_s10 }
 0x3f8   : > { %1209 = vrot.lane.b32.xlu0 %v820_v10, %s2924_s6 }
 0x3f9   : > { %1075 = vrot.lane.b32.xlu1 %v819_v11, %s2923_s10 }
 0x3fd   : > { %1207 = vrot.lane.b32.xlu1 %v819_v11, %s2924_s6 }
 0x46b   : > { %v873_v19 = vpop.xlane.xlu0 %872 }
 0x46c   : > { %v877_v20 = vsub.f32 %v863_v13, %v873_v19 }
 0x46d   : > { %v876_v21 = vpop.xlane.xlu1 %875 }
 0x46e   : > { %v879_v22 = vmul.f32 1.442695, %v877_v20  ;;  %v878_v23 = vsub.f32 %v866_v16, %v876_v21 }
 0x46f   : > { %v945_v26 = vpop.permute.xlu0 %944 }
 0x470   : > { %v881_v24 = vmul.f32 1.442695, %v878_v23  ;;  %2578 = vpow2.f32 %v879_v22  ;;  %v950_v36 = vsel %vm822_vm1, %v945_v26, 0 }
 0x471   : > { %v942_v25 = vpop.permute.xlu1 %941 }
 0x472   : > { %2580 = vpow2.f32 %v881_v24 }
 0x473   : > { %v1210_v30 = vpop.permute.xlu0 %1209 }
 0x474   : > { %v1215_v35 = vsel %vm822_vm1, %v1210_v30, 0 }
 0x475   : > { %v1078_v27 = vpop.permute.xlu1 %1077 }
 0x476   : > { %v1083_v28 = vsel %vm822_vm1, %v1078_v27, 0 }
 0x477   : > { %2312 = vmatpush3.bf16.xpose.msra.mxu0 %v1083_v28 }
 0x478   : > { %2323 = vmatprep.subr.bf16.mxu0 %v2919_v6 }
 0x479   : > { %v1076_v33 = vpop.permute.xlu1 %1075 }
 0x47a   : > { %v3460_v29 = vpop.eup %2578 }
 0x47c   : > { %v3462_v31 = vpop.eup %2580 }
 0x47d   : > { %v889_v34 = vpack.c.bf16 %v3462_v31, %v3460_v29  ;;  %v1208_v37 = vpop.permute.xlu1 %1207 }
 0x47e   : > { %2314 = vmatmul.mubr.msk.bf16.vlgmr.msra.gmra.mrb[4].mxu0 %vm822_vm1, %v1076_v33 }
 0x47f   : > { %2296 = vmatmul.mubr.msk.bf16.vlgmr.msra.gmra.mrb[8].mxu1 %vm870_vm2, %v889_v34  ;;  %2324 = vmatpush3.bf16.xpose.msra.mxu0 %v1215_v35 }
 0x480   : > { %2300 = vmatpush3.bf16.xpose.msra.mxu1 %v950_v36  ;;  %2325 = vmatprep.mubr.msk.bf16.mxu0 %vm2921_vm0, %v2919_v6 }
 0x481   : > { %2301 = vmatprep.mubr.msk.bf16.mxu1 %vm2921_vm0, %v2919_v6  ;;  %2305 = vmatprep.subr.bf16.mxu1 %v2919_v6 }
 0x482   : > { %2335 = vmatprep.subr.bf16.mxu0 %v2919_v6 }
 0x486   : > { %2326 = vmatmul.mubr.msk.bf16.vlgmr.msra.gmra.mrb[8].mxu0 %vm822_vm1, %v1208_v37 }
 0x487   : > { %2302 = vmatmul.mubr.msk.bf16.vlgmr.msra.gmra.mrb[12].mxu1 %vm822_vm1, %v942_v25  ;;  %2351 = vmatprep.mubr.msk.bf16.mxu0 %vm2921_vm0, %v2919_v6 }
 0x488   : > { %2307 = vmatprep.mubr.msk.bf16.mxu1 %vm2921_vm0, %v2919_v6 }
 0x551   : > { %v1119_v38 = vpop.f32.mrb[4].mxu0 }
 0x552   : > { %v3482_v39 = vpop.f32.mrb[8].mxu1  ;;  %v2315_v40 = vpop.f32.mrb[5].mxu0  ;;  %v1126_v41 = vsel %vm870_vm2, %v1119_v38, -inf }
 0x553   : > { %1127 = vmax.xlane.f32.xlu0 %v1126_v41  ;;  %v2297_v42 = vpop.f32.mrb[9].mxu1  ;;  %v1122_v43 = vpop.f32.mrb[6].mxu0 }
 0x554   : > { %v3485_v44 = vpop.f32.mrb[10].mxu1  ;;  %v2316_v48 = vpop.f32.mrb[7].mxu0  ;;  %v1129_v50 = vsel %vm870_vm2, %v1122_v43, -inf  ;;  %v883_v42 = vsel %vm870_vm2, %v3460_v29, 0.0 }
 0x555   : > { %v2298_v49 = vpop.f32.mrb[11].mxu1 }
 0x556   : > { %v2526_v49 = vld [vmem:[%s3338_s18] sm:$0xff]  }
 0x557   : > { %1130 = vmax.xlane.f32.xlu0 %v1129_v50  ;;  %2336 = vmatpush3.bf16.msra.mxu0 %v2526_v49 }
 0x558   : > { %2337 = vmatprep.subr.bf16.mxu0 %v2919_v6 }
 0x559   : > { %v1251_v52 = vpop.f32.mrb[8].mxu0 }
 0x55a   : > { %v986_v53 = vpop.f32.mrb[12].mxu1  ;;  %v2327_v54 = vpop.f32.mrb[9].mxu0  ;;  %v1258_v55 = vsel %vm870_vm2, %v1251_v52, -inf }
 0x55b   : > { %1259 = vmax.xlane.f32.xlu0 %v1258_v55  ;;  %v2303_v56 = vpop.f32.mrb[13].mxu1  ;;  %v1254_v57 = vpop.f32.mrb[10].mxu0  ;;  %v993_v62 = vsel %vm870_vm2, %v986_v53, -inf }
 0x55c   : > { %v989_v58 = vpop.f32.mrb[14].mxu1  ;;  %v2328_v59 = vpop.f32.mrb[11].mxu0  ;;  %v1261_v60 = vsel %vm870_vm2, %v1254_v57, -inf }
 0x55d   : > { %1262 = vmax.xlane.f32.xlu1 %v1261_v60  ;;  %v2304_v61 = vpop.f32.mrb[15].mxu1  ;;  %v996_v63 = vsel %vm870_vm2, %v989_v58, -inf  ;;  %v2527_v60 = vld [vmem:[%s3338_s18 + $0x8] sm:$0xff]  }
 0x55e   : > { %2338 = vmatpush3.bf16.msra.mxu0 %v2527_v60  ;;  %v2528_v61 = vld [vmem:[%s3338_s18 + $0x10] sm:$0xff]  }
 0x55f   : > { %994 = vmax.xlane.f32.xlu0 %v993_v62  ;;  %2339 = vmatprep.subr.bf16.mxu0 %v2919_v6 }
 0x561   : > { %997 = vmax.xlane.f32.xlu1 %v996_v63 }
 0x562   : > { %2340 = vmatpush3.bf16.msra.mxu0 %v2528_v61 }
 0x563   : > { %2341 = vmatprep.subr.bf16.mxu0 %v2919_v6 }
 0x572   : > { %1145 = vrot.lane.b32.xlu1 %v3441_v7, %s2923_s10 }
 0x575   : > { %1013 = vrot.lane.b32.xlu0 %v3441_v7, %s2922_s1 }
 0x576   : > { %1277 = vrot.lane.b32.xlu1 %v3441_v7, %s2924_s6 }
 0x5e0   : > { %v1128_v0 = vpop.xlane.xlu0 %1127 }
 0x5e1   : > { %v1132_v1 = vsub.f32 %v1119_v38, %v1128_v0 }
 0x5e3   : > { %v1134_v4 = vmul.f32 1.442695, %v1132_v1 }
 0x5e4   : > { %v1131_v5 = vpop.xlane.xlu0 %1130 }
 0x5e5   : > { %2582 = vpow2.f32 %v1134_v4  ;;  %v1133_v8 = vsub.f32 %v1122_v43, %v1131_v5  ;;  %v886_v43 = vsel %vm870_vm2, %v3462_v31, 0.0  ;;  %v2530_v5 = vld [vmem:[%s3338_s18 + $0x20] sm:$0xff]  }
 0x5e7   : > { %v1136_v9 = vmul.f32 1.442695, %v1133_v8 }
 0x5e8   : > { %v1260_v10 = vpop.xlane.xlu0 %1259 }
 0x5e9   : > { %2584 = vpow2.f32 %v1136_v9  ;;  %v1264_v11 = vsub.f32 %v1251_v52, %v1260_v10  ;;  %v2531_v10 = vld [vmem:[%s3338_s18 + $0x28] sm:$0xff]  }
 0x5ea   : > { %v1263_v12 = vpop.xlane.xlu1 %1262 }
 0x5eb   : > { %v1266_v13 = vmul.f32 1.442695, %v1264_v11  ;;  %v1265_v14 = vsub.f32 %v1254_v57, %v1263_v12 }
 0x5ec   : > { %v995_v15 = vpop.xlane.xlu0 %994 }
 0x5ed   : > { %v1268_v16 = vmul.f32 1.442695, %v1265_v14  ;;  %v999_v17 = vsub.f32 %v986_v53, %v995_v15  ;;  %2586 = vpow2.f32 %v1266_v13  ;;  %v2532_v13 = vld [vmem:[%s3338_s18 + $0x30] sm:$0xff]  }
 0x5ee   : > { %v998_v18 = vpop.xlane.xlu1 %997 }
 0x5ef   : > { %v2583_v19 = vpop.eup %2582  ;;  %2588 = vpow2.f32 %v1268_v16  ;;  %v1001_v7 = vmul.f32 1.442695, %v999_v17  ;;  %v1000_v20 = vsub.f32 %v989_v58, %v998_v18 }
 0x5f0   : > { %v1014_v21 = vpop.permute.xlu0 %1013  ;;  %v1138_v22 = vsel %vm870_vm2, %v2583_v19, 0.0 }
 0x5f1   : > { %2590 = vpow2.f32 %v1001_v7  ;;  %v1003_v23 = vmul.f32 1.442695, %v1000_v20  ;;  %1139 = vadd.xlane.f32.xlu0 %v1138_v22  ;;  %2306 = vmatpush3.bf16.msra.mxu1 %v1014_v21  ;;  %v2533_v7 = vld [vmem:[%s3338_s18 + $0x38] sm:$0xff]  }
 0x5f2   : > { %2317 = vmatprep.subr.bf16.mxu1 %v2919_v6  ;;  %v1146_v38 = vpop.permute.xlu1 %1145 }
 0x5f3   : > { %v2585_v24 = vpop.eup %2584  ;;  %2592 = vpow2.f32 %v1003_v23 }
 0x5f4   : > { %v1141_v25 = vsel %vm870_vm2, %v2585_v24, 0.0  ;;  %v1144_v26 = vpack.c.bf16 %v2585_v24, %v2583_v19 }
 0x5f5   : > { %1142 = vadd.xlane.f32.xlu0 %v1141_v25 }
 0x5f6   : > { %v1278_v48 = vpop.permute.xlu1 %1277 }
 0x5f7   : > { %v2587_v27 = vpop.eup %2586 }
 0x5f8   : > { %v1270_v40 = vsel %vm870_vm2, %v2587_v27, 0.0 }
 0x5f9   : > { %v2589_v28 = vpop.eup %2588 }
 0x5fa   : > { %v1276_v30 = vpack.c.bf16 %v2589_v28, %v2587_v27  ;;  %v1273_v41 = vsel %vm870_vm2, %v2589_v28, 0.0 }
 0x5fb   : > { %v2591_v33 = vpop.eup %2590 }
 0x5fc   : > { %v1005_v34 = vsel %vm870_vm2, %v2591_v33, 0.0 }
 0x5fd   : > { %v2593_v35 = vpop.eup %2592  ;;  %1006 = vadd.xlane.f32.xlu1 %v1005_v34 }
 0x5fe   : > { %v1008_v36 = vsel %vm870_vm2, %v2593_v35, 0.0  ;;  %v1011_v37 = vpack.c.bf16 %v2593_v35, %v2591_v33 }
 0x5ff   : > { %1009 = vadd.xlane.f32.xlu0 %v1008_v36 }
 0x600   : > { %2308 = vmatmul.mubr.msk.bf16.vlgmr.msra.gmra.mrb[16].mxu1 %vm870_vm2, %v1011_v37 }
 0x601   : > { %2318 = vmatpush3.bf16.msra.mxu1 %v1146_v38  ;;  %1271 = vadd.xlane.f32.xlu1 %v1270_v40  ;;  %v1360_v40 = vsub.s32 2, %v3420_v45 }
 0x602   : > { %2319 = vmatprep.mubr.msk.bf16.mxu1 %vm2921_vm0, %v2919_v6  ;;  %2329 = vmatprep.subr.bf16.mxu1 %v2919_v6 }
 0x603   : > { %1274 = vadd.xlane.f32.xlu0 %v1273_v41  ;;  %v1361_v41 = vrot.slane %v3426_v47, %v1360_v40  ;;  %v2565_v40 = vld [vmem:[%s3358_s20 + $0x18] sm:$0xff]  }
 0x605   : > { %884 = vadd.xlane.f32.xlu1 %v883_v42 }
 0x607   : > { %887 = vadd.xlane.f32.xlu0 %v886_v43 }
 0x608   : > { %2320 = vmatmul.mubr.msk.bf16.vlgmr.msra.gmra.mrb[20].mxu1 %vm870_vm2, %v1144_v26 }
 0x609   : > { %2330 = vmatpush3.bf16.msra.mxu1 %v1278_v48  ;;  %2331 = vmatprep.mubr.msk.bf16.mxu1 %vm2921_vm0, %v2919_v6 }
 0x610   : > { %2332 = vmatmul.mubr.msk.bf16.vlgmr.msra.gmra.mrb[24].mxu1 %vm870_vm2, %v1276_v30 }
 0x611   : > { %1627 = vmatprep.mubr.bf16.mxu1 %v2920_v32 }
 0x67e   : > { %v1140_v29 = vpop.xlane.xlu0 %1139 }
 0x682   : > { %v1143_v50 = vpop.xlane.xlu0 %1142 }
 0x68a   : > { %v1007_v31 = vpop.xlane.xlu1 %1006 }
 0x68c   : > { %v1010_v52 = vpop.xlane.xlu0 %1009 }
 0x68e   : > { %v1272_v53 = vpop.xlane.xlu1 %1271 }
 0x690   : > { %v1275_v54 = vpop.xlane.xlu0 %1274 }
 0x692   : > { %v885_v55 = vpop.xlane.xlu1 %884 }
 0x693   : > { %2594 = vrcp.f32 %v885_v55  ;;  %v2539_v55 = vld [vmem:[%s3340_s19 + $0x14] ss:$8 sps:$4 sm:$0xff]  }
 0x694   : > { %v888_v56 = vpop.xlane.xlu0 %887 }
 0x695   : > { %2596 = vrcp.f32 %v888_v56  ;;  %v2537_v56 = vld [vmem:[%s3340_s19 + $0x10] ss:$8 sps:$4 sm:$0xff]  }
 0x696   : > { %2598 = vrcp.f32 %v1007_v31 }
 0x697   : > { %2600 = vrcp.f32 %v1010_v52 }
 0x698   : > { %2602 = vrcp.f32 %v1140_v29 }
 0x699   : > { %2604 = vrcp.f32 %v1143_v50 }
 0x69a   : > { %2606 = vrcp.f32 %v1272_v53  ;;  %v2534_v53 = vld [vmem:[%s3340_s19] ss:$8 sps:$4 sm:$0xff]  }
 0x69b   : > { %2608 = vrcp.f32 %v1275_v54  ;;  %v2536_v54 = vld [vmem:[%s3340_s19 + $0x4] ss:$8 sps:$4 sm:$0xff]  }
 0x69c   : > { %1595 = vmatprep.subr.bf16.mxu1 %v2536_v54  ;;  %v536_v54 = vld [vmem:[%s3356_s8] sm:$0x3] }
 0x69d   : > { %v2595_v57 = vpop.eup %2594  ;;  %1596 = vmatpush1.bf16.msra.mxu1 %v2534_v53  ;;  %v2573_v53 = vld [vmem:[%s3358_s20 + $0x38] sm:$0xff]  }
 0x69e   : > { %v936_v32 = vmul.f32 %v2595_v57, %v3482_v39  ;;  %v2529_v39 = vld [vmem:[%s3338_s18 + $0x18] sm:$0xff]   ;;  %1597 = vmatprep.subr.bf16.mxu1 %v2539_v55  ;;  %v1508_v55 = vrot.slane %v536_v54, %v3423_v46 }
 0x69f   : > { %v2597_v58 = vpop.eup %2596  ;;  %2342 = vmatpush3.bf16.msra.mxu0 %v2529_v39  ;;  %v2542_v39 = vld [vmem:[%s3340_s19 + $0x24] ss:$8 sps:$4 sm:$0xff]  }
 0x6a0   : > { %938 = vst.msk [vmem:[#allocation2] sm:$0xff] %vm822_vm1, %v936_v32  ;;  %v937_v59 = vmul.f32 %v2597_v58, %v3485_v44  ;;  %v2599_v62 = vpop.eup %2598  ;;  %2343 = vmatprep.subr.bf16.mxu0 %v2919_v6 }
 0x6a1   : > { %v2601_v1 = vpop.eup %2600  ;;  %1598 = vmatpush1.bf16.msra.mxu1 %v2537_v56  ;;  %v1512_v56 = vrot.slane %v536_v54, %v3432_v51 }
 0x6a2   : > { %939 = vst.msk [vmem:[#allocation2 + $0x8] sm:$0xff] %vm822_vm1, %v937_v59  ;;  %v2603_v11 = vpop.eup %2602  ;;  %1599 = vmatprep.subr.bf16.mxu1 %v2542_v39 }
 0x6a3   : > { %2344 = vmatpush3.bf16.msra.mxu0 %v2530_v5  ;;  %v2605_v16 = vpop.eup %2604  ;;  %v2549_v5 = vld [vmem:[%s3340_s19 + $0x50] ss:$8 sps:$4 sm:$0xff]  }
 0x6a4   : > { %2345 = vmatprep.subr.bf16.mxu0 %v2919_v6  ;;  %v2607_v20 = vpop.eup %2606 }
 0x6a5   : > { %v2609_v24 = vpop.eup %2608 }
 0x6a7   : > { %2346 = vmatpush3.bf16.msra.mxu0 %v2531_v10  ;;  %v2557_v10 = vld [vmem:[%s3340_s19 + $0x74] ss:$8 sps:$4 sm:$0xff]  }
 0x6a8   : > { %2347 = vmatprep.subr.bf16.mxu0 %v2919_v6 }
 0x6ab   : > { %2348 = vmatpush3.bf16.msra.mxu0 %v2532_v13 }
 0x6ac   : > { %2349 = vmatprep.subr.bf16.mxu0 %v2919_v6 }
 0x6af   : > { %2350 = vmatpush3.bf16.msra.mxu0 %v2533_v7 }
 0x6d3   : > { %v1053_v63 = vpop.f32.mrb[16].mxu1 }
 0x6d4   : > { %v1062_v44 = vmul.f32 %v2599_v62, %v1053_v63  ;;  %v2309_v0 = vpop.f32.mrb[17].mxu1  ;;  %v2540_v62 = vld [vmem:[%s3340_s19 + $0x20] ss:$8 sps:$4 sm:$0xff]   ;;  %v2545_v63 = vld [vmem:[%s3340_s19 + $0x34] ss:$8 sps:$4 sm:$0xff]  }
 0x6d5   : > { %v1056_v4 = vpop.f32.mrb[18].mxu1  ;;  %1600 = vmatpush1.bf16.msra.mxu1 %v2540_v62  ;;  %v2548_v0 = vld [vmem:[%s3340_s19 + $0x44] ss:$8 sps:$4 sm:$0xff]  }
 0x6d6   : > { %v1063_v8 = vmul.f32 %v2601_v1, %v1056_v4  ;;  %1066 = vrot.lane.b32.xlu1 %v1062_v44, %s2924_s6  ;;  %v2310_v9 = vpop.f32.mrb[19].mxu1  ;;  %v2543_v44 = vld [vmem:[%s3340_s19 + $0x30] ss:$8 sps:$4 sm:$0xff]   ;;  %1601 = vmatprep.subr.bf16.mxu1 %v2545_v63  ;;  %v2546_v1 = vld [vmem:[%s3340_s19 + $0x40] ss:$8 sps:$4 sm:$0xff]  }
 0x6d7   : > { %v2551_v4 = vld [vmem:[%s3340_s19 + $0x54] ss:$8 sps:$4 sm:$0xff]   ;;  %v2552_v9 = vld [vmem:[%s3340_s19 + $0x60] ss:$8 sps:$4 sm:$0xff]  }
 0x6d8   : > { %1068 = vrot.lane.b32.xlu0 %v1063_v8, %s2924_s6  ;;  %v2554_v8 = vld [vmem:[%s3340_s19 + $0x64] ss:$8 sps:$4 sm:$0xff]  }
 0x6d9   : > { %1602 = vmatpush1.bf16.msra.mxu1 %v2543_v44 }
 0x6da   : > { %1603 = vmatprep.subr.bf16.mxu1 %v2548_v0 }
 0x6db   : > { %v1185_v12 = vpop.f32.mrb[20].mxu1 }
 0x6dc   : > { %v1194_v14 = vmul.f32 %v2603_v11, %v1185_v12  ;;  %v2321_v15 = vpop.f32.mrb[21].mxu1  ;;  %v2555_v11 = vld [vmem:[%s3340_s19 + $0x70] ss:$8 sps:$4 sm:$0xff]   ;;  %s3758_s19 = sld [smem:[#allocation33_spill]] (!%p2200_p10) }
 0x6dd   : > { %v1188_v17 = vpop.f32.mrb[22].mxu1  ;;  %1604 = vmatpush1.bf16.msra.mxu1 %v2546_v1 }
 0x6de   : > { %v1195_v18 = vmul.f32 %v2605_v16, %v1188_v17  ;;  %1198 = vrot.lane.b32.xlu1 %v1194_v14, %s2923_s10  ;;  %v2322_v19 = vpop.f32.mrb[23].mxu1  ;;  %1605 = vmatprep.subr.bf16.mxu1 %v2551_v4 }
 0x6e1   : > { %1606 = vmatpush1.bf16.msra.mxu1 %v2549_v5 }
 0x6e2   : > { %1200 = vrot.lane.b32.xlu1 %v1195_v18, %s2923_s10  ;;  %1607 = vmatprep.subr.bf16.mxu1 %v2554_v8  ;;  %v1477_v18 = vsub.s32 3, %v3420_v45 }
 0x6e3   : > { %v1317_v21 = vpop.f32.mrb[24].mxu1 }
 0x6e4   : > { %v1326_v22 = vmul.f32 %v2607_v20, %v1317_v21  ;;  %v2333_v23 = vpop.f32.mrb[25].mxu1  ;;  %v1478_v20 = vrot.slane %v3426_v47, %v1477_v18  ;;  %v1483_v21 = vsub.s32 4, %v3420_v45 }
 0x6e5   : > { %v1320_v25 = vpop.f32.mrb[26].mxu1  ;;  %1608 = vmatpush1.bf16.msra.mxu1 %v2552_v9 }
 0x6e6   : > { %v1327_v26 = vmul.f32 %v2609_v24, %v1320_v25  ;;  %1330 = vrot.lane.b32.xlu1 %v1326_v22, %s2922_s1  ;;  %v2334_v27 = vpop.f32.mrb[27].mxu1  ;;  %1609 = vmatprep.subr.bf16.mxu1 %v2557_v10  ;;  %v1484_v25 = vrot.slane %v3426_v47, %v1483_v21 }
 0x6e8   : > { %1332 = vrot.lane.b32.xlu0 %v1327_v26, %s2922_s1 }
 0x6e9   : > { %1610 = vmatpush1.bf16.msra.mxu1 %v2555_v11 }
 0x748   : > { %v1067_v28 = vpop.permute.xlu1 %1066 }
 0x749   : > { %1073 = vst.msk [vmem:[#allocation2] sm:$0xff] %vm1072_vm3, %v1067_v28 }
 0x74a   : > { %v1069_v30 = vpop.permute.xlu0 %1068 }
 0x74b   : > { %1074 = vst.msk [vmem:[#allocation2 + $0x8] sm:$0xff] %vm1072_vm3, %v1069_v30 }
 0x750   : > { %v1199_v6 = vpop.permute.xlu1 %1198 }
 0x751   : > { %1205 = vst.msk [vmem:[#allocation2] sm:$0xff] %vm1204_vm4, %v1199_v6  ;;  %v2558_v6 = vld [vmem:[%s3358_s20 + $0x40] sm:$0xff]  }
 0x752   : > { %2245 = vmatprep.subr.bf16.mxu0 %v2558_v6 }
 0x754   : > { %v1201_v33 = vpop.permute.xlu1 %1200 }
 0x755   : > { %1206 = vst.msk [vmem:[#allocation2 + $0x8] sm:$0xff] %vm1204_vm4, %v1201_v33  ;;  %v2559_v33 = vld [vmem:[%s3358_s20] sm:$0xff]  }
 0x758   : > { %v1331_v34 = vpop.permute.xlu1 %1330 }
 0x759   : > { %1337 = vst.msk [vmem:[#allocation2] sm:$0xff] %vm1336_vm5, %v1331_v34  ;;  %v2560_v34 = vld [vmem:[%s3358_s20 + $0x48] sm:$0xff]  }
 0x75a   : > { %v1333_v35 = vpop.permute.xlu0 %1332 }
 0x75b   : > { %1338 = vst.msk [vmem:[#allocation2 + $0x8] sm:$0xff] %vm1336_vm5, %v1333_v35  ;;  %v2561_v35 = vld [vmem:[%s3358_s20 + $0x8] sm:$0xff]  }
 0x760   : > { %v1339_v36 = vld [vmem:[#allocation2] sm:$0xff] }
 0x762   : > { %v1340_v37 = vld [vmem:[#allocation2 + $0x8] sm:$0xff] }
 0x763   : > { %v1341_v38 = vpack.c.bf16 %v1340_v37, %v1339_v36  ;;  %v2562_v36 = vld [vmem:[%s3358_s20 + $0x50] sm:$0xff]  }
 0x764   : > { %v2563_v37 = vld [vmem:[%s3358_s20 + $0x10] sm:$0xff]  }
 0x765   : > { %2352 = vmatmul.mubr.bf16.vlgmr.msra.gmra.mrb[12].mxu0 %v1341_v38  ;;  %v2564_v38 = vld [vmem:[%s3358_s20 + $0x58] sm:$0xff]  }
 0x766   : > { %2246 = vmatpush3.bf16.msra.mxu0 %v2559_v33 }
 0x767   : > { %2247 = vmatprep.subr.bf16.mxu0 %v2560_v34 }
 0x76a   : > { %2248 = vmatpush3.bf16.msra.mxu0 %v2561_v35 }
 0x76b   : > { %2249 = vmatprep.subr.bf16.mxu0 %v2562_v36 }
 0x76e   : > { %2250 = vmatpush3.bf16.msra.mxu0 %v2563_v37 }
 0x76f   : > { %2251 = vmatprep.subr.bf16.mxu0 %v2564_v38 }
 0x772   : > { %2252 = vmatpush3.bf16.msra.mxu0 %v2565_v40  ;;  %v1710_v40 = vsub.s32 5, %v3420_v45 }
 0x838   : > { %v1444_v42 = vpop.f32.mrb[12].mxu0 }
 0x839   : > { %v1445_v43 = vadd.f32 %v1444_v42, %v1361_v41  ;;  %v2353_v48 = vpop.f32.mrb[13].mxu0  ;;  %v2567_v42 = vld [vmem:[%s3358_s20 + $0x20] sm:$0xff]  }
 0x83a   : > { %v1447_v49 = vpop.f32.mrb[14].mxu0  ;;  %v2569_v48 = vld [vmem:[%s3358_s20 + $0x28] sm:$0xff]  }
 0x83b   : > { %v3546_v29 = vadd.f32 %v1445_v43, %v3366_v2  ;;  %v1448_v50 = vadd.f32 %v1447_v49, %v1361_v41  ;;  %v2354_v31 = vpop.f32.mrb[15].mxu0  ;;  %v2566_v41 = vld [vmem:[%s3358_s20 + $0x60] sm:$0xff]   ;;  %v2568_v43 = vld [vmem:[%s3358_s20 + $0x68] sm:$0xff]   ;;  %v2570_v49 = vld [vmem:[%s3358_s20 + $0x70] sm:$0xff]  }
 0x83c   : > { %2253 = vmatprep.subr.bf16.mxu0 %v2566_v41  ;;  %v2572_v31 = vld [vmem:[%s3358_s20 + $0x78] sm:$0xff]  }
 0x83d   : > { %v3549_v52 = vadd.f32 %v1448_v50, %v3369_v3  ;;  %1453 = vadd.xlane.f32.xlu1 %v3546_v29  ;;  %2254 = vmatpush3.bf16.msra.mxu0 %v2567_v42  ;;  %v2571_v50 = vld [vmem:[%s3358_s20 + $0x30] sm:$0xff]   ;;  %v1711_v42 = vrot.slane %v3426_v47, %v1710_v40 }
 0x83e   : > { %2255 = vmatprep.subr.bf16.mxu0 %v2568_v43 }
 0x83f   : > { %1455 = vadd.xlane.f32.xlu0 %v3549_v52 }
 0x841   : > { %2256 = vmatpush3.bf16.msra.mxu0 %v2569_v48 }
 0x842   : > { %2257 = vmatprep.subr.bf16.mxu0 %v2570_v49 }
 0x845   : > { %2258 = vmatpush3.bf16.msra.mxu0 %v2571_v50 }
 0x846   : > { %2259 = vmatprep.subr.bf16.mxu0 %v2572_v31 }
 0x849   : > { %2260 = vmatpush3.bf16.msra.mxu0 %v2573_v53 }
 0x8ca   : > { %v1454_v2 = vpop.xlane.xlu1 %1453 }
 0x8cb   : > { %v1457_v57 = vmul.f32 0.0078125, %v1454_v2 }
 0x8cc   : > { %v1456_v3 = vpop.xlane.xlu0 %1455 }
 0x8cd   : > { %v1459_v32 = vsub.f32 %v3546_v29, %v1457_v57  ;;  %v1458_v58 = vmul.f32 0.0078125, %v1456_v3 }
 0x8cf   : > { %v1460_v59 = vsub.f32 %v3549_v52, %v1458_v58  ;;  %v1461_v60 = vmul.f32 %v1459_v32, %v1459_v32 }
 0x8d1   : > { %1463 = vadd.xlane.f32.xlu0 %v1461_v60  ;;  %v1462_v61 = vmul.f32 %v1460_v59, %v1460_v59 }
 0x8d5   : > { %1465 = vadd.xlane.f32.xlu0 %v1462_v61 }
 0x95e   : > { %v1464_v12 = vpop.xlane.xlu0 %1463 }
 0x95f   : > { %v1467_v13 = vmul.f32 0.0078125, %v1464_v12 }
 0x961   : > { %v1469_v14 = vadd.f32 1e-05, %v1467_v13 }
 0x962   : > { %v1466_v15 = vpop.xlane.xlu0 %1465 }
 0x963   : > { %2610 = vrsqrt.f32 %v1469_v14  ;;  %v1468_v16 = vmul.f32 0.0078125, %v1466_v15 }
 0x965   : > { %v1470_v17 = vadd.f32 1e-05, %v1468_v16 }
 0x967   : > { %2612 = vrsqrt.f32 %v1470_v17 }
 0x96d   : > { %v2611_v19 = vpop.eup %2610 }
 0x96e   : > { %v1473_v7 = vmul.f32 %v2611_v19, %v1459_v32 }
 0x970   : > { %v1479_v24 = vmul.f32 %v1478_v20, %v1473_v7 }
 0x971   : > { %v2613_v22 = vpop.eup %2612 }
 0x972   : > { %v1474_v23 = vmul.f32 %v2613_v22, %v1460_v59  ;;  %v1485_v27 = vadd.f32 %v1484_v25, %v1479_v24 }
 0x974   : > { %v1480_v26 = vmul.f32 %v1478_v20, %v1474_v23 }
 0x976   : > { %v1486_v28 = vadd.f32 %v1484_v25, %v1480_v26 }
 0x978   : > { %v1487_v30 = vpack.c.bf16 %v1486_v28, %v1485_v27 }
 0x97a   : > { %1628 = vmatmul.mubr.bf16.vlgmr.msra.gmra.mrb[28].mxu1 %v1487_v30 }
 0xa4d   : > { %v1629_v2 = vpop.f32.mrb[28].mxu1 }
 0xa4e   : > { %v1630_v57 = vadd.f32 %v1629_v2, %v1508_v55  ;;  %v1631_v3 = vpop.f32.mrb[29].mxu1 }
 0xa4f   : > { %v1632_v32 = vadd.f32 %v1631_v3, %v1512_v56  ;;  %v1633_v58 = vpop.f32.mrb[30].mxu1 }
 0xa50   : > { %v1642_v59 = vmul.f32 0.044715, %v1630_v57  ;;  %v1634_v60 = vadd.f32 %v1633_v58, %v1508_v55  ;;  %v1635_v61 = vpop.f32.mrb[31].mxu1  ;;  %v1638_v25 = vmul.f32 0.5, %v1630_v57 }
 0xa51   : > { %v1643_v39 = vmul.f32 0.044715, %v1632_v32  ;;  %v1636_v62 = vadd.f32 %v1635_v61, %v1512_v56  ;;  %v1639_v28 = vmul.f32 0.5, %v1632_v32 }
 0xa52   : > { %v1646_v63 = vmul.f32 %v1642_v59, %v1630_v57  ;;  %v1644_v44 = vmul.f32 0.044715, %v1634_v60  ;;  %v1640_v26 = vmul.f32 0.5, %v1634_v60 }
 0xa53   : > { %v1647_v0 = vmul.f32 %v1643_v39, %v1632_v32  ;;  %v1645_v1 = vmul.f32 0.044715, %v1636_v62  ;;  %v1641_v30 = vmul.f32 0.5, %v1636_v62 }
 0xa54   : > { %v1650_v4 = vmul.f32 %v1646_v63, %v1630_v57  ;;  %v1648_v5 = vmul.f32 %v1644_v44, %v1634_v60  ;;  %v1857_v63 = vld [vmem:[%s3758_s19] sm:$0x3] (!%p2200_p10) }
 0xa55   : > { %v1651_v8 = vmul.f32 %v1647_v0, %v1632_v32  ;;  %v1649_v9 = vmul.f32 %v1645_v1, %v1636_v62  ;;  %v1883_v44 = vrot.slane (!%p2200_p10), %v1857_v63, %v3423_v46 }
 0xa56   : > { %v1654_v10 = vadd.f32 %v1650_v4, %v1630_v57  ;;  %v1652_v11 = vmul.f32 %v1648_v5, %v1634_v60  ;;  %v1889_v4 = vrot.slane (!%p2200_p10), %v1857_v63, %v3432_v51 }
 0xa57   : > { %v1653_v12 = vmul.f32 %v1649_v9, %v1636_v62  ;;  %v1655_v13 = vadd.f32 %v1651_v8, %v1632_v32 }
 0xa58   : > { %v1658_v14 = vmul.f32 0.7978846, %v1654_v10  ;;  %v1656_v15 = vadd.f32 %v1652_v11, %v1634_v60 }
 0xa59   : > { %v1657_v16 = vadd.f32 %v1653_v12, %v1636_v62  ;;  %v1659_v17 = vmul.f32 0.7978846, %v1655_v13 }
 0xa5a   : > { %2614 = vtanh.f32 %v1658_v14  ;;  %v1660_v18 = vmul.f32 0.7978846, %v1656_v15 }
 0xa5b   : > { %v1661_v19 = vmul.f32 0.7978846, %v1657_v16  ;;  %2616 = vtanh.f32 %v1659_v17 }
 0xa5c   : > { %2618 = vtanh.f32 %v1660_v18 }
 0xa5d   : > { %2620 = vtanh.f32 %v1661_v19 }
 0xa64   : > { %v2615_v7 = vpop.eup %2614 }
 0xa65   : > { %v2617_v20 = vpop.eup %2616  ;;  %v1666_v21 = vadd.f32 1.0, %v2615_v7 }
 0xa66   : > { %v2619_v22 = vpop.eup %2618  ;;  %v1667_v23 = vadd.f32 1.0, %v2617_v20 }
 0xa67   : > { %v2621_v24 = vpop.eup %2620  ;;  %v1668_v27 = vadd.f32 1.0, %v2619_v22  ;;  %v1670_v33 = vmul.f32 %v1666_v21, %v1638_v25 }
 0xa68   : > { %v1669_v6 = vadd.f32 1.0, %v2621_v24  ;;  %v1671_v35 = vmul.f32 %v1667_v23, %v1639_v28 }
 0xa69   : > { %v1672_v34 = vmul.f32 %v1668_v27, %v1640_v26 }
 0xa6a   : > { %v1673_v36 = vmul.f32 %v1669_v6, %v1641_v30 }
 0xa6b   : > { %v1674_v37 = vpack.c.bf16 %v1672_v34, %v1670_v33 }
 0xa6c   : > { %v1675_v38 = vpack.c.bf16 %v1673_v36, %v1671_v35 }
 0xa6e   : > { %1840 = vmatprep.mubr.bf16.mxu0 %v1675_v38 }
 0xa6f   : > { %1841 = vmatmul.mubr.bf16.vlgmr.msra.gmra.mrb[16].mxu0 %v1674_v37 }
 0xb42   : > { %v2261_v41 = vpop.f32.mrb[16].mxu0 }
 0xb43   : > { %v2262_v43 = vpop.f32.mrb[17].mxu0 }
 0xb44   : > { %v2263_v48 = vadd.f32 %v2262_v43, %v2261_v41  ;;  %v2264_v49 = vpop.f32.mrb[18].mxu0 }
 0xb45   : > { %v2265_v50 = vpop.f32.mrb[19].mxu0 }
 0xb46   : > { %v1843_v31 = vadd.f32 %v2263_v48, %v1711_v42  ;;  %v2266_v53 = vadd.f32 %v2265_v50, %v2264_v49  ;;  %1856 = sbr.rel (%p2200_p10) target bundleno = 3206 (0xc86), region = 80 }
 0xb48   : > { %v1849_v54 = vadd.f32 %v1843_v31, %v3546_v29  ;;  %v1846_v55 = vadd.f32 %v2266_v53, %v1711_v42 }
 0xb4a   : > { %1851 = vst [vmem:[%s3360_s16] sm:$0xff] %v1849_v54  ;;  %v1850_v56 = vadd.f32 %v1846_v55, %v3549_v52  ;;  %1858 = vadd.xlane.f32.xlu0 (!%p2200_p10), %v1849_v54 }
 0xb4c   : > { %1852 = vst [vmem:[%s3360_s16 + $0x8] sm:$0xff] %v1850_v56 }
 0xb4e   : > { %1860 = vadd.xlane.f32.xlu0 %v1850_v56 }
 0xbd7   : > { %v1859_v45 = vpop.xlane.xlu0 %1858 }
 0xbd8   : > { %v1862_v47 = vmul.f32 0.0078125, %v1859_v45 }
 0xbda   : > { %v1864_v2 = vsub.f32 %v1849_v54, %v1862_v47 }
 0xbdb   : > { %v1861_v57 = vpop.xlane.xlu0 %1860 }
 0xbdc   : > { %v1863_v3 = vmul.f32 0.0078125, %v1861_v57  ;;  %v1866_v32 = vmul.f32 %v1864_v2, %v1864_v2 }
 0xbde   : > { %v1865_v58 = vsub.f32 %v1850_v56, %v1863_v3  ;;  %1868 = vadd.xlane.f32.xlu1 %v1866_v32 }
 0xbe0   : > { %v1867_v59 = vmul.f32 %v1865_v58, %v1865_v58 }
 0xbe2   : > { %1870 = vadd.xlane.f32.xlu1 %v1867_v59 }
 0xc6b   : > { %v1869_v29 = vpop.xlane.xlu1 %1868 }
 0xc6c   : > { %v1872_v60 = vmul.f32 0.0078125, %v1869_v29 }
 0xc6e   : > { %v1874_v52 = vadd.f32 1e-05, %v1872_v60 }
 0xc6f   : > { %v1871_v61 = vpop.xlane.xlu1 %1870 }
 0xc70   : > { %2622 = vrsqrt.f32 %v1874_v52  ;;  %v1873_v39 = vmul.f32 0.0078125, %v1871_v61 }
 0xc72   : > { %v1875_v62 = vadd.f32 1e-05, %v1873_v39 }
 0xc74   : > { %2624 = vrsqrt.f32 %v1875_v62 }
 0xc7a   : > { %v2623_v0 = vpop.eup %2622 }
 0xc7b   : > { %v1878_v1 = vmul.f32 %v2623_v0, %v1864_v2 }
 0xc7d   : > { %v1884_v5 = vmul.f32 %v1883_v44, %v1878_v1 }
 0xc7e   : > { %v2625_v8 = vpop.eup %2624 }
 0xc7f   : > { %v1890_v9 = vadd.f32 %v1889_v4, %v1884_v5  ;;  %v1879_v10 = vmul.f32 %v2625_v8, %v1865_v58 }
 0xc81   : > { %1892 = vst [vmem:[%s3360_s16] sm:$0xff] %v1890_v9  ;;  %v1885_v11 = vmul.f32 %v1883_v44, %v1879_v10 }
 0xc83   : > { %v1891_v12 = vadd.f32 %v1889_v4, %v1885_v11 }
 0xc85   : > { %1893 = vst [vmem:[%s3360_s16 + $0x8] sm:$0xff] %v1891_v12 }
 0xc86 PF: > { %s3759_s22 = sld [smem:[#allocation21_spill]]  ;;  %s3760_s12 = sld [smem:[#allocation34_spill]] }
 0xc87   : > { %s1908_s11 = sshll.u32 %s3360_s16, 4  ;;  %s1895_s23 = scalar_lea.sflag [#allocation5], %s3322_s21  ;;  %s3615_s11 = int_to_ptr.vmem [resolvable:$true] %s1908_s11 }
 0xc88   : > { %s2776_s5 = scalar_lea.vmem %s3615_s11, 256  ;;  %p3762_p7 = scmp.ne.s32.totalorder %s3740_s29, 0 }
 0xc89   : > { %p2777_p13 = scmp.ne.s32.totalorder %s3615_s11, %s2776_s5  ;;  %s2925_s26 = smov [#allocation12]  }
 0xc8a   : > { %s2780_s8 = sshll.u32 %s2925_s26, 4  ;;  %s2781_s8 = int_to_ptr.vmem [resolvable:$false] %s2780_s8 }
 0xc8b   : > { %p2778_p1 = pnand %p2777_p13, %p3762_p7  ;;  %s2782_s20 = scalar_lea.vmem %s2781_s8, 512 }
 0xc8c   : > { %s2210_s25 = sshll.u32 %s3759_s22, 8  ;;  %s3761_s24 = smov %s3760_s12 }
 0xc8d   : > { %s3612_s27 = scalar_lea.hbm %s3760_s12, %s2210_s25  ;;  %p2779_p6 = pneg %p2778_p1 }
 0xc8e   : > { %p2783_p12 = scmp.lt.s32.totalorder %s3615_s11, %s2781_s8  ;;  %p2784_p11 = scmp.lt.s32.totalorder %s2782_s20, %s2776_s5 }
 0xc90   : > { %p2785_p2 = por %p2784_p11, %p2783_p12 }
 0xc92   : > { %p2786_p8 = pnand %p2785_p2, %p2779_p6 }
 0xc94   : > { %2789 = shalt.err (!%p2786_p8)
}
 0xc95   : > { %s2790_s16 = scalar_lea.hbm %s3612_s27, 256  ;;  %s2794_s6 = scalar_lea.hbm %s3761_s24, 512 }
 0xc96   : > { %p2791_p9 = scmp.ne.s32.totalorder %s3612_s27, %s2790_s16  ;;  %p2795_p3 = scmp.lt.u32.totalorder %s3612_s27, %s3761_s24 }
 0xc97   : > { %p2796_p0 = scmp.lt.u32.totalorder %s2794_s6, %s2790_s16  ;;  %p2798_p13 = scmp.lt.u32.totalorder %s2790_s16, %s3612_s27 }
 0xc98   : > { %p2792_p5 = pnand %p2791_p9, %p3762_p7 }
 0xc99   : > { %p2797_p10 = por %p2796_p0, %p2795_p3 }
 0xc9a   : > { %p2793_p4 = pneg %p2792_p5 }
 0xc9b   : > { %p2799_p1 = por %p2798_p13, %p2797_p10 }
 0xc9d   : > { %p2800_p6 = pnand %p2799_p1, %p2793_p4 }
 0xc9f   : > { %2803 = shalt.err (!%p2800_p6)
}
 0xca0   : > { %s2926_s17 = smov 128   ;;  %s2927_s19 = smov 8  }
 0xca1   : > { %2368 = dma.vmem_to_hbm [thread:$0]  (%p3762_p7), %s3615_s11, 256, %s3612_s27, %s1895_s23, %s2926_s17, %s2926_s17, %s2927_s19  }
 0xca2 PF: > { %p2391_p12 = scmp.ge.s32.totalorder %s2906_s15, 2  ;;  %s1923_s22 = sand.u32 1, %s2878_s30  }
 0xca3   : > { %p3763_p11 = scmp.ne.s32.totalorder %s3742_s3, 0  ;;  %s1924_s25 = scalar_lea.sflag [#allocation5], %s1923_s22 }
 0xca5   : > { %p2387_p2 = pnand %p2391_p12, %p3763_p11 }
 0xca7   : > { %2861 = dma.done.wait (!%p2387_p2), %s1924_s25, 256  }
 0xca8   : > { %2863 = vsyncadd (!%p2387_p2), %s1924_s25, 4294967040  ;;  %s30_s15 = sadd.s32 1, %s2906_s15   ;;  %s3764_s27 = sld [smem:[#allocation17_spill]] }
 0xca9   : > { %p27_p8 = scmp.ge.s32.totalorder %s30_s15, 6   ;;  %s3765_s28 = sld [smem:[#allocation18_spill]] }
 0xcaa   : > { %s3766_s29 = sld [smem:[#allocation24_spill]]  ;;  %s3767_s21 = sld [smem:[#allocation19_spill]] }
 0xcab   : > { %s3768_s10 = sld [smem:[#allocation28_spill]]  ;;  %s3769_s12 = sld [smem:[#allocation22_spill]] }
 0xcac   : > { %s3770_s7 = sld [smem:[#allocation23_spill]]  ;;  %s3771_s14 = sld [smem:[#allocation27_spill]] }
 0xcad   : > { %s3772_s30 = smov %s2882_s9  ;;  %s3774_s11 = smov %s2898_s13 }
 0xcae   :  { %29 = sbr.rel (!%p27_p8) target bundleno = 20 (0x14), region = 159 }
 0xcb0   : > { %s3773_s9 = smov %s3767_s21 }
 0xcb2   : > { %s3775_s13 = smov %s3770_s7 }
 0xcb5   :  { %1929 = vsyncpa [#allocation4], 1 }
 0xcb6   :  { %1931 = vsyncpa [#allocation4 + $0x1], 1 }
 0xcb7   :  { %1932 = vsyncpa [#allocation7], 1 }
 0xcb8   :  { %1934 = vsyncpa [#allocation7 + $0x1], 1 }
 0xcb9   :  { %1935 = vsyncpa [#allocation10], 1 }
 0xcba   :  { %1937 = vsyncpa [#allocation10 + $0x1], 1 }
 0xcbb   :  { %1938 = vsyncpa [#allocation5], 1 }
 0xcbc   :  { %1940 = vsyncpa [#allocation5 + $0x1], 1 }

</bundles_post_ra>
